<compile_context>
chip_gen: v7x
topology: tpu7x:2x2x1
jax: 0.10.0
libtpu: 0.0.40
codegen_flags: <defaults>
</compile_context>

<pallas_src>
import functools

import jax
import jax.numpy as jnp
from jax.experimental import pallas as pl
from jax.experimental.pallas import tpu as pltpu


def _pick_tile(n, candidates, min_tiles=1):
    """Largest candidate tile that divides n and leaves at least min_tiles tiles."""
    for c in candidates:
        if n % c == 0 and n // c >= min_tiles:
            return c
    return candidates[-1]


# ---------------------------------------------------------------------------
# Kernel 0: graph preprocessing — run ONCE per graph, cache across layers/steps.
#   Single streaming pass over the f32 adjacency: emits int8 adjacency (0/1 is
#   lossless) and norm = rsqrt(clamp(in_degree, 1)).
# ---------------------------------------------------------------------------
def preprocess_kernel(adj_ref, adj_i8_ref, norm_ref):
    k = pl.program_id(1)
    a = adj_ref[...]                                     # (TM, TK) f32, values 0/1
    adj_i8_ref[...] = a.astype(jnp.int8)                 # 1 B/elem in HBM

    @pl.when(k == 0)
    def _():
        norm_ref[...] = jnp.zeros_like(norm_ref)

    # Row-sum partial -> in-degree accumulator (XLU reduce; free while HBM-bound).
    norm_ref[...] += jnp.sum(a, axis=1, keepdims=True)

    @pl.when(k == pl.num_programs(1) - 1)
    def _():
        norm_ref[...] = jax.lax.rsqrt(jnp.maximum(norm_ref[...], 1.0))


def preprocess_graph(adj, *, base=256):
    """adj: (N, N) f32 with adj[v, u] = 1 iff edge u->v.
    Returns (adj_int8 padded to n_pad, norm (n_pad, 1) f32).  Cache across layers."""
    N = adj.shape[0]
    n_pad = pl.cdiv(N, base) * base
    if n_pad != N:
        # TODO(synk): mask ragged edge tiles in-kernel instead of this extra XLA
        # pad pass when N is not a multiple of the base tile.
        adj = jnp.pad(adj, ((0, n_pad - N), (0, n_pad - N)))

    tm = _pick_tile(n_pad, (512, 256), min_tiles=2)
    tk = _pick_tile(n_pad, (1024, 512, 256))

    adj_i8, norm = pl.pallas_call(
        preprocess_kernel,
        out_shape=(jax.ShapeDtypeStruct((n_pad, n_pad), jnp.int8),
                   jax.ShapeDtypeStruct((n_pad, 1), jnp.float32)),
        grid=(n_pad // tm, n_pad // tk),
        in_specs=[pl.BlockSpec((tm, tk), lambda i, k: (i, k))],
        out_specs=(pl.BlockSpec((tm, tk), lambda i, k: (i, k)),
                   pl.BlockSpec((tm, 1), lambda i, k: (i, 0))),
        compiler_params=pltpu.CompilerParams(
            dimension_semantics=("parallel", "arbitrary")),
        cost_estimate=pl.CostEstimate(
            flops=n_pad * n_pad,
            transcendentals=n_pad,
            bytes_accessed=n_pad * n_pad * 4 + n_pad * n_pad * 1 + n_pad * 4),
    )(adj)
    return adj_i8, norm


# ---------------------------------------------------------------------------
# Kernel 1: projection hw = (h * norm) @ W^T  (bf16 MXU operands, f32 acc)
# ---------------------------------------------------------------------------
def project_kernel(h_ref, norm_ref, w_ref, hw_ref):
    hn = (h_ref[...] * norm_ref[...]).astype(jnp.bfloat16)
    hw = jnp.dot(hn, w_ref[...], preferred_element_type=jnp.float32)
    hw_ref[...] = hw.astype(hw_ref.dtype)


# ---------------------------------------------------------------------------
# Kernel 2: out = (adj @ hw) * norm + b, reduction tiled over adj columns.
#   Accumulates directly into the resident f32 output block (no scratch).
# ---------------------------------------------------------------------------
def aggregate_kernel(adj_ref, hw_ref, norm_ref, b_ref, out_ref, *, tk, hw_resident):
    k = pl.program_id(1)

    @pl.when(k == 0)
    def _():
        out_ref[...] = jnp.zeros_like(out_ref)

    a = adj_ref[...].astype(jnp.bfloat16)                # int8 -> bf16 (VPU, free)
    if hw_resident:
        hw_blk = hw_ref[pl.ds(pl.multiple_of(k * tk, tk), tk), :]
    else:
        hw_blk = hw_ref[...]
    out_ref[...] += jnp.dot(a, hw_blk, preferred_element_type=jnp.float32)

    @pl.when(k == pl.num_programs(1) - 1)
    def _():
        out_ref[...] = out_ref[...] * norm_ref[...] + b_ref[...]


def gcn_layer(adj_i8, norm, h, weight, bias):
    """One GCN layer on a preprocessed graph.
    adj_i8: (n_pad, n_pad) int8 0/1, norm: (n_pad, 1) f32 (from preprocess_graph),
    h: (N, in_dim) f32, weight: (out_dim, in_dim) f32, bias: (out_dim,) f32."""
    n_pad = adj_i8.shape[0]
    N, in_dim = h.shape
    out_dim = weight.shape[0]
    out_pad = pl.cdiv(out_dim, 128) * 128                # lane-dense stores / MXU N-dim

    if N != n_pad:
        h = jnp.pad(h, ((0, n_pad - N), (0, 0)))

    tm = _pick_tile(n_pad, (512, 256), min_tiles=2)      # >=2 row tiles for 2 TCs
    tk = _pick_tile(n_pad, (1024, 512, 256))
    grid_rows = n_pad // tm
    grid_k = n_pad // tk

    # Zero-padded, pre-transposed bf16 weights; f32 bias (f32 epilogue math).
    w_t = jnp.zeros((in_dim, out_pad), jnp.bfloat16).at[:, :out_dim].set(
        weight.T.astype(jnp.bfloat16))
    b2 = jnp.zeros((1, out_pad), jnp.float32).at[:, :out_dim].set(bias[None, :])

    # Projection: hw = (h * norm) @ W^T -> (n_pad, out_pad) bf16.
    # NOTE: hw is held in bf16 before the N x N aggregation (f32 accumulation); keep
    # it f32 instead if tighter accuracy is required (still cheap vs. the adj stream).
    hw = pl.pallas_call(
        project_kernel,
        out_shape=jax.ShapeDtypeStruct((n_pad, out_pad), jnp.bfloat16),
        grid=(grid_rows,),
        in_specs=[
            pl.BlockSpec((tm, in_dim), lambda i: (i, 0)),
            pl.BlockSpec((tm, 1), lambda i: (i, 0)),
            pl.BlockSpec((in_dim, out_pad), lambda i: (0, 0)),
        ],
        out_specs=pl.BlockSpec((tm, out_pad), lambda i: (i, 0)),
        compiler_params=pltpu.CompilerParams(dimension_semantics=("parallel",)),
    )(h, norm, w_t)

    # Keep hw fully VMEM-resident (read from HBM exactly once) when the buffered
    # copy fits comfortably under the 32 MiB default scoped VMEM (v7x-safe, so no
    # explicit vmem_limit_bytes needed); otherwise stream (tk, out_pad) blocks.
    hw_bytes = n_pad * out_pad * 2
    hw_resident = 2 * hw_bytes <= 16 * 1024 * 1024
    hw_spec = (pl.BlockSpec((n_pad, out_pad), lambda i, k: (0, 0)) if hw_resident
               else pl.BlockSpec((tk, out_pad), lambda i, k: (k, 0)))
    hw_hbm_read = hw_bytes if hw_resident else grid_rows * n_pad * out_pad * 2

    # Aggregation: out = (adj @ hw) * norm + b.
    # TODO(synk): exploit graph sparsity (scalar-prefetch block-nonzero mask /
    # blocked-CSR index_map + vertex reordering) to skip all-zero adj tiles.
    out = pl.pallas_call(
        functools.partial(aggregate_kernel, tk=tk, hw_resident=hw_resident),
        out_shape=jax.ShapeDtypeStruct((n_pad, out_pad), jnp.float32),
        grid=(grid_rows, grid_k),
        in_specs=[
            pl.BlockSpec((tm, tk), lambda i, k: (i, k)),
            hw_spec,
            pl.BlockSpec((tm, 1), lambda i, k: (i, 0)),
            pl.BlockSpec((1, out_pad), lambda i, k: (0, 0)),
        ],
        out_specs=pl.BlockSpec((tm, out_pad), lambda i, k: (i, 0)),
        compiler_params=pltpu.CompilerParams(
            dimension_semantics=("parallel", "arbitrary")),
        cost_estimate=pl.CostEstimate(
            flops=2 * n_pad * n_pad * out_pad,
            transcendentals=0,
            bytes_accessed=(n_pad * n_pad * 1          # int8 adjacency (read once)
                            + hw_hbm_read              # hw (resident: single read)
                            + n_pad * 4 + out_pad * 4  # norm + bias
                            + n_pad * out_pad * 4)),   # f32 output
    )(adj_i8, hw, norm, b2)

    return out[:N, :out_dim]


def gcn_forward(adj, h, weight, bias):
    """Convenience one-shot path.  For multi-layer GCNs call preprocess_graph once
    and reuse (adj_i8, norm) for every layer / training step."""
    adj_i8, norm = preprocess_graph(adj)
    return gcn_layer(adj_i8, norm, h, weight, bias)


def _reference(adj, h, weight, bias):
    degs = jnp.maximum(jnp.sum(adj, axis=1, keepdims=True), 1.0)
    norm = degs ** -0.5
    x = h * norm
    x = adj @ x
    x = x * norm
    return x @ weight.T + bias[None, :]


if __name__ == "__main__":
    key = jax.random.PRNGKey(0)
    N, in_dim, out_dim = 512, 64, 32

    k_adj, k_h, k_w, k_b = jax.random.split(key, 4)

    # Random sparse-ish 0/1 adjacency; some rows may be all-zero (exercises clamp(min=1)).
    adj = (jax.random.uniform(k_adj, (N, N)) < 0.05).astype(jnp.float32)
    h = jax.random.normal(k_h, (N, in_dim), dtype=jnp.float32)

    # nn.Linear-style init (uniform in +/- 1/sqrt(in_dim)).
    bound = 1.0 / (in_dim ** 0.5)
    weight = jax.random.uniform(k_w, (out_dim, in_dim), minval=-bound, maxval=bound,
                                dtype=jnp.float32)
    bias = jax.random.uniform(k_b, (out_dim,), minval=-bound, maxval=bound,
                              dtype=jnp.float32)

    # Preprocess once (cacheable across layers), then run the layer.
    adj_i8, norm = preprocess_graph(adj)
    out = gcn_layer(adj_i8, norm, h, weight, bias)
    out = jax.block_until_ready(out)

    ref = _reference(adj, h, weight, bias)
    assert out.shape == (N, out_dim)
    # bf16 operands into the MXU (f32 accumulation) -> bf16-level tolerance.
    assert jnp.allclose(out, ref, atol=2e-2, rtol=2e-2)

    print("KERNEL_OK")
</pallas_src>

<mosaic_0001>
module attributes {stable_mosaic.version = 11 : i64} {
  func.func @preprocess_kernel(%arg0: i32, %arg1: i32, %arg2: memref<256x512xf32, #tpu.memory_space<vmem>>, %arg3: memref<256x512xi8, #tpu.memory_space<vmem>>, %arg4: memref<256x1xf32, #tpu.memory_space<vmem>>) attributes {dimension_semantics = [#tpu.dimension_semantics<parallel>, #tpu.dimension_semantics<arbitrary>], iteration_bounds = array<i64: 2, 1>, scalar_prefetch = 0 : i64, scratch_operands = 0 : i64, tpu.core_type = #tpu.core_type<tc>, window_params = [{transform_indices = @transform_0, window_bounds = array<i64: 256, 512>}, {transform_indices = @transform_1, window_bounds = array<i64: 256, 512>}, {transform_indices = @transform_2, window_bounds = array<i64: 256, 1>}]} {
    %c0 = arith.constant 0 : index
    %c0_0 = arith.constant 0 : index
    %0 = vector.load %arg2[%c0, %c0_0] : memref<256x512xf32, #tpu.memory_space<vmem>>, vector<256x512xf32>
    %1 = arith.fptosi %0 : vector<256x512xf32> to vector<256x512xi8>
    %c0_1 = arith.constant 0 : index
    %c0_2 = arith.constant 0 : index
    %2 = vector.load %arg3[%c0_1, %c0_2] : memref<256x512xi8, #tpu.memory_space<vmem>>, vector<256x512xi8>
    tpu.vector_store %arg3[%c0_1, %c0_2], %1 {strides = array<i32>} : memref<256x512xi8, #tpu.memory_space<vmem>>, vector<256x512xi8>,
    %c0_i32 = arith.constant 0 : i32
    %3 = arith.cmpi eq, %arg1, %c0_i32 : i32
    %4 = arith.extui %3 : i1 to i32
    %c0_i32_3 = arith.constant 0 : i32
    %5 = arith.cmpi ne, %4, %c0_i32_3 : i32
    scf.if %5 {
      %cst_10 = arith.constant 0.000000e+00 : f32
      %14 = vector.broadcast %cst_10 : f32 to vector<256x1xf32>
      %c0_11 = arith.constant 0 : index
      %c0_12 = arith.constant 0 : index
      %15 = vector.load %arg4[%c0_11, %c0_12] : memref<256x1xf32, #tpu.memory_space<vmem>>, vector<256x1xf32>
      tpu.vector_store %arg4[%c0_11, %c0_12], %14 {strides = array<i32>} : memref<256x1xf32, #tpu.memory_space<vmem>>, vector<256x1xf32>,
    } else {
    }
    %c0_4 = arith.constant 0 : index
    %c0_5 = arith.constant 0 : index
    %6 = vector.load %arg4[%c0_4, %c0_5] : memref<256x1xf32, #tpu.memory_space<vmem>>, vector<256x1xf32>
    %cst = arith.constant dense<0.000000e+00> : vector<256xf32>
    %7 = vector.multi_reduction <add>, %0, %cst [1] : vector<256x512xf32> to vector<256xf32>
    %8 = vector.shape_cast %7 : vector<256xf32> to vector<256x1xf32>
    %9 = arith.addf %6, %8 : vector<256x1xf32>
    %c0_6 = arith.constant 0 : index
    %c0_7 = arith.constant 0 : index
    %10 = vector.load %arg4[%c0_6, %c0_7] : memref<256x1xf32, #tpu.memory_space<vmem>>, vector<256x1xf32>
    tpu.vector_store %arg4[%c0_6, %c0_7], %9 {strides = array<i32>} : memref<256x1xf32, #tpu.memory_space<vmem>>, vector<256x1xf32>,
    %c0_i32_8 = arith.constant 0 : i32
    %11 = arith.cmpi eq, %arg1, %c0_i32_8 : i32
    %12 = arith.extui %11 : i1 to i32
    %c0_i32_9 = arith.constant 0 : i32
    %13 = arith.cmpi ne, %12, %c0_i32_9 : i32
    scf.if %13 {
      %c0_10 = arith.constant 0 : index
      %c0_11 = arith.constant 0 : index
      %14 = vector.load %arg4[%c0_10, %c0_11] : memref<256x1xf32, #tpu.memory_space<vmem>>, vector<256x1xf32>
      %cst_12 = arith.constant 1.000000e+00 : f32
      %15 = vector.broadcast %cst_12 : f32 to vector<256x1xf32>
      %16 = arith.maximumf %14, %15 : vector<256x1xf32>
      %17 = math.rsqrt %16 : vector<256x1xf32>
      %c0_13 = arith.constant 0 : index
      %c0_14 = arith.constant 0 : index
      %18 = vector.load %arg4[%c0_13, %c0_14] : memref<256x1xf32, #tpu.memory_space<vmem>>, vector<256x1xf32>
      tpu.vector_store %arg4[%c0_13, %c0_14], %17 {strides = array<i32>} : memref<256x1xf32, #tpu.memory_space<vmem>>, vector<256x1xf32>,
    } else {
    }
    return
  }
  func.func @transform_0(%arg0: i32, %arg1: i32) -> (i32, i32) {
    %c0_i32 = arith.constant 0 : i32
    return %arg0, %arg1 : i32, i32
  }
  func.func @transform_1(%arg0: i32, %arg1: i32) -> (i32, i32) {
    %c0_i32 = arith.constant 0 : i32
    return %arg0, %arg1 : i32, i32
  }
  func.func @transform_2(%arg0: i32, %arg1: i32) -> (i32, i32) {
    %c0_i32 = arith.constant 0 : i32
    %c0_i32_0 = arith.constant 0 : i32
    return %arg0, %c0_i32 : i32, i32
  }
}

</mosaic_0001>

<bundles_post_ra>
// kernel: tpu_custom_call.1
= control target key start
LH: loop header
LB: loop body
LE: loop exit
PB: predicated region body
PF: predicated region fallthrough
CT: control target
= control target key end

     0   :  { %8 = vsyncpa [#allocation3], 0  ;;  %s2277_s0 = inlined_call_operand.hbm [shape: f32[512,512], index: 0, kind: input, shape index: {}]   ;;  %s2278_s1 = inlined_call_operand.hbm [shape: s8[512,512], index: 1, kind: output, shape index: {0}]   ;;  %s2279_s2 = inlined_call_operand.vmem [shape: f32[512,1], index: 2, kind: output, shape index: {1}]  }
   0x1   :  { %10 = vsyncpa [#allocation3 + $0x1], 0 }
   0x2   :  { %11 = vsyncpa [#allocation4], 0 }
   0x3   :  { %13 = vsyncpa [#allocation4 + $0x1], 0  ;;  %s1660_s9 = smov 0   ;;  %s1662_s10 = smov 0  }
   0x4   :  { %s1664_s11 = smov 0   ;;  %s1666_s12 = smov 0  }
   0x5   :  { %s1668_s13 = smov 0   ;;  %s1670_s14 = smov 0  }
   0x6 LB: > { %s1370_s15 = sadd.s32 4294967295, %s1636_s14   ;;  %s1371_s16 = sadd.s32 4294967294, %s1636_s14   ;;  %s1636_s14 = sphi %s1670_s14, %s19_s14   ;;  %s1632_s13 = sphi %s1668_s13, %s2294_s13   ;;  %s1628_s12 = sphi %s1666_s12, %s2293_s12   ;;  %s1624_s11 = sphi %s1664_s11, %s2292_s11   ;;  %s1620_s10 = sphi %s1662_s10, %s2291_s10   ;;  %s1616_s9 = sphi %s1660_s9, %s2290_s9  }
   0x7   : > { %s31_s17 = sadd.s32 1, %s1632_s13  ;;  %s40_s18 = sadd.s32 1, %s1624_s11 }
   0x8   : > { %p33_p0 = scmp.ge.s32.totalorder %s31_s17, 2  ;;  %p47_p1 = scmp.ne.s32.totalorder %s1624_s11, %s1620_s10 }
   0x9   : > { %p48_p2 = scmp.eq.s32.totalorder %s1636_s14, 0  ;;  %p53_p3 = scmp.ne.s32.totalorder %s1620_s10, %s1616_s9 }
   0xa   : > { %s2296_s17 = smov (%p33_p0, %s31_s17), 0  ;;  %p54_p5 = scmp.eq.s32.totalorder %s1370_s15, 0 }
   0xb   : > { %p1701_p4 = por %p48_p2, %p47_p1  ;;  %s35_s20 = ssub.s32 %s1632_s13, %s2296_s17 }
   0xc   : > { %p79_p6 = scmp.eq.s32.totalorder %s1370_s15, 1  ;;  %p38_p7 = scmp.eq.s32.totalorder %s35_s20, 0 }
   0xd   : > { %p1707_p8 = por %p54_p5, %p53_p3  ;;  %p85_p10 = scmp.eq.s32.totalorder %s1371_s16, 1 }
   0xe   : > { %p1711_p9 = por %p79_p6, %p47_p1  ;;  %p1405_p13 = scmp.lt.s32.totalorder %s1636_s14, 2 }
   0xf   : > { %s1716_s23 = scalar_select %p38_p7, %s1624_s11, %s40_s18  }
  0x10   : > { %s2283_s22 = scalar_select %p1711_p9, 1, 0 }
  0x11   : > { %p1718_p11 = por %p85_p10, %p53_p3  ;;  %s131_s25 = sand.u32 1, %s1624_s11  }
  0x12   : > { %s1374_s26 = sshll.u32 %s131_s25, 10  ;;  %s1390_s27 = sshll.u32 %s1632_s13, 14 }
  0x13   : > { %s2284_s24 = scalar_select %p1718_p11, 1, 0 }
  0x14   : > { %s1729_s30 = scalar_lea.hbm %s2277_s0, %s1390_s27  ;;  %s135_s3 = scalar_lea.vmem [#allocation2], %s1374_s26 }
  0x15   : > { %s145_s4 = sshll.u32 %s135_s3, 4  ;;  %p1735_p0 = pnand %p1405_p13, %p1701_p4  ;;  %s1731_s4 = int_to_ptr.vmem [resolvable:$true] %s145_s4 }
  0x16   : > { %s1740_s6 = scalar_lea.sflag [#allocation3], %s131_s25  ;;  %s1524_s7 = scalar_lea.hbm %s1729_s30, 16384 }
  0x17   : > { %p1525_p2 = scmp.ne.s32.totalorder %s1729_s30, %s1524_s7  ;;  %p1526_p3 = pneg %p1735_p0 }
  0x18   : > { %s1529_s16 = scalar_lea.hbm %s2277_s0, 32768  ;;  %p1530_p4 = scmp.lt.u32.totalorder %s1729_s30, %s2277_s0 }
  0x19   : > { %p1527_p5 = pnand %p1526_p3, %p1525_p2  ;;  %p1531_p7 = scmp.lt.u32.totalorder %s1529_s16, %s1524_s7 }
  0x1a   : > { %p1533_p13 = scmp.lt.u32.totalorder %s1524_s7, %s1729_s30 }
  0x1b   : > { %p1528_p6 = pneg %p1527_p5  ;;  %p1532_p10 = por %p1531_p7, %p1530_p4 }
  0x1d   : > { %p1534_p12 = por %p1533_p13, %p1532_p10 }
  0x1f   : > { %p1535_p1 = pnand %p1534_p12, %p1528_p6 }
  0x21   : > { %1538 = shalt.err (!%p1535_p1)
}
  0x22   : > { %s1539_s20 = scalar_lea.vmem %s1731_s4, 16384  ;;  %s1638_s25 = smov [#allocation2]  }
  0x23   : > { %p1540_p2 = scmp.ne.s32.totalorder %s1731_s4, %s1539_s20  ;;  %s1544_s26 = sshll.u32 %s1638_s25, 4  ;;  %s1545_s26 = int_to_ptr.vmem [resolvable:$false] %s1544_s26 }
  0x24   : > { %s1546_s27 = scalar_lea.vmem %s1545_s26, 32768  ;;  %p1547_p9 = scmp.lt.s32.totalorder %s1731_s4, %s1545_s26 }
  0x25   : > { %p1542_p5 = pnand %p1540_p2, %p1526_p3  ;;  %p1548_p4 = scmp.lt.s32.totalorder %s1546_s27, %s1539_s20 }
  0x27   : > { %p1543_p11 = pneg %p1542_p5  ;;  %p1549_p7 = por %p1548_p4, %p1547_p9 }
  0x29   : > { %p1550_p10 = pnand %p1549_p7, %p1543_p11 }
  0x2b   : > { %1553 = shalt.err (!%p1550_p10)
}
  0x2c   : > { %s1639_s28 = smov 512   ;;  %s1640_s29 = smov 32  }
  0x2d   : > { %1400 = dma.hbm_to_vmem [thread:$0]  (!%p1735_p0), %s1729_s30, 16384, %s1731_s4, %s1740_s6, %s1639_s28, %s1639_s28, %s1640_s29  }
  0x2e   : > { %p153_p12 = scmp.lt.s32.totalorder %s1636_s14, 3  ;;  %p2286_p1 = scmp.ge.s32.totalorder %s1636_s14, 1 }
  0x30   : > { %p154_p3 = pnand %p2286_p1, %p153_p12 }
  0x31   : > { %s1772_s3 = sand.u32 (!%p154_p3), 1, %s1620_s10  }
  0x32   : > { %157 = sbr.rel (%p154_p3) target bundleno = 308 (0x134), region = 24  ;;  %s1379_s7 = sshll.u32 (!%p154_p3), %s1772_s3, 10 }
  0x33   : > { %s160_s8 = scalar_lea.sflag (!%p154_p3), [#allocation3], %s1772_s3  ;;  %s1776_s15 = scalar_lea.vmem (!%p154_p3), [#allocation2], %s1379_s7 }
  0x39   : > { %1607 = dma.done.wait (%p1707_p8), %s160_s8, 16384  }
  0x3a   : > { %1609 = vsyncadd (%p1707_p8), %s160_s8, 4294950912  ;;  %s1381_s30 = sshll.u32 %s1628_s12, 5  ;;  %vm811_vm0 = vcmask 7168   ;;  %v1789_v0 = vld [vmem:[%s1776_s15 + $0x40] sm:$0xff]  ;;  %v1792_v1 = vld [vmem:[%s1776_s15 + $0x48] sm:$0xff]  ;;  %v1641_v3 = vmov 0.0  }
  0x3b   : > { %p194_p9 = scmp.lt.s32.totalorder %s1381_s30, 63  ;;  %v1795_v2 = vld [vmem:[%s1776_s15 + $0x50] sm:$0xff]  ;;  %v210_v4 = vld [vmem:[%s1776_s15 + $0x58] sm:$0xff]  ;;  %v336_v5 = vtrunc.f32 %v1792_v1  ;;  %v886_v7 = vadd.f32 %v1792_v1, %v1789_v0  ;;  %v335_v8 = vtrunc.f32 %v1789_v0  ;;  %v199_v9 = vld [vmem:[%s1776_s15] sm:$0xff]  ;;  %s1380_s21 = sshll.u32 %s1772_s3, 8 }
  0x3c   : > { %v337_v6 = vtrunc.f32 %v1795_v2  ;;  %v200_v10 = vld [vmem:[%s1776_s15 + $0x8] sm:$0xff]  ;;  %v338_v11 = vtrunc.f32 %v210_v4  ;;  %v201_v12 = vld [vmem:[%s1776_s15 + $0x10] sm:$0xff]  ;;  %v202_v13 = vld [vmem:[%s1776_s15 + $0x18] sm:$0xff]  ;;  %v327_v16 = vtrunc.f32 %v199_v9  ;;  %s1890_s18 = scalar_lea.vmem [#allocation5], %s1380_s21  ;;  %s1392_s19 = sshll.u32 %s1628_s12, 12 }
  0x3d   : > { %s2298_s30 = smov (!%p194_p9, %s1381_s30), 63  ;;  %v328_v14 = vtrunc.f32 %v200_v10  ;;  %v876_v15 = vadd.f32 %v200_v10, %v199_v9  ;;  %v211_v17 = vld [vmem:[%s1776_s15 + $0x60] sm:$0xff]  ;;  %v887_v18 = vadd.f32 %v886_v7, %v1795_v2  ;;  %v329_v19 = vtrunc.f32 %v201_v12  ;;  %v212_v21 = vld [vmem:[%s1776_s15 + $0x68] sm:$0xff]  ;;  %v213_v22 = vld [vmem:[%s1776_s15 + $0x70] sm:$0xff]  ;;  %s1254_s20 = sshll.u32 %s1890_s18, 4  ;;  %s2036_s20 = int_to_ptr.vmem [resolvable:$true] %s1254_s20 }
  0x3e   : > { %s1382_s4 = sshll.u32 %s2298_s30, 3  ;;  %v330_v20 = vtrunc.f32 %v202_v13  ;;  %v214_v23 = vld [vmem:[%s1776_s15 + $0x78] sm:$0xff]  ;;  %v339_v24 = vtrunc.f32 %v211_v17  ;;  %v340_v26 = vtrunc.f32 %v212_v21  ;;  %v341_v27 = vtrunc.f32 %v213_v22  ;;  %v203_v29 = vld [vmem:[%s1776_s15 + $0x20] sm:$0xff]  ;;  %v204_v33 = vld [vmem:[%s1776_s15 + $0x28] sm:$0xff]  ;;  %s2034_s27 = scalar_lea.hbm %s2278_s1, %s1392_s19 }
  0x3f   : > { %s1786_s16 = scalar_lea.vmem %s2279_s2, %s1382_s4  ;;  %v877_v25 = vadd.f32 %v876_v15, %v201_v12  ;;  %v342_v28 = vtrunc.f32 %v214_v23  ;;  %v888_v30 = vadd.f32 %v887_v18, %v210_v4  ;;  %v891_v31 = vadd.f32 %v212_v21, %v211_v17  ;;  %v205_v38 = vld [vmem:[%s1776_s15 + $0x30] sm:$0xff]  ;;  %v206_v39 = vld [vmem:[%s1776_s15 + $0x38] sm:$0xff]  ;;  %v219_v45 = vld [vmem:[%s1776_s15 + $0xa0] sm:$0xff]  ;;  %s1233_s28 = scalar_lea.sflag [#allocation4], %s1772_s3 }
  0x40   : > { %814 = vst.msk [vmem:[%s1786_s16 + $0x10] sm:$0xff] %vm811_vm0, %v1641_v3  ;;  %812 = vst.msk [vmem:[%s1786_s16] sm:$0xff] %vm811_vm0, %v1641_v3  ;;  %v459_v32 = vpack.c.f32.eXmY %v335_v8, %v339_v24, 312  ;;  %v331_v34 = vtrunc.f32 %v203_v29  ;;  %v469_v36 = vpack.c.f32.eXmY %v336_v5, %v340_v26, 312  ;;  %v332_v40 = vtrunc.f32 %v204_v33  ;;  %v220_v49 = vld [vmem:[%s1776_s15 + $0xa8] sm:$0xff]  ;;  %v221_v54 = vld [vmem:[%s1776_s15 + $0xb0] sm:$0xff] }
  0x41   : > { %813 = vst.msk [vmem:[%s1786_s16 + $0x8] sm:$0xff] %vm811_vm0, %v1641_v3  ;;  %815 = vst.msk [vmem:[%s1786_s16 + $0x18] sm:$0xff] %vm811_vm0, %v1641_v3  ;;  %v878_v35 = vadd.f32 %v877_v25, %v202_v13  ;;  %v479_v37 = vpack.c.f32.eXmY %v337_v6, %v341_v27, 312  ;;  %889 = vadd.xlane.f32.xlu1 %v888_v30  ;;  %v489_v41 = vpack.c.f32.eXmY %v338_v11, %v342_v28, 312  ;;  %v222_v59 = vld [vmem:[%s1776_s15 + $0xb8] sm:$0xff]  ;;  %v215_v61 = vld [vmem:[%s1776_s15 + $0x80] sm:$0xff] }
  0x42   : > { %816 = vst.msk [vmem:[%s1786_s16 + $0x20] sm:$0xff] %vm811_vm0, %v1641_v3  ;;  %817 = vst.msk [vmem:[%s1786_s16 + $0x28] sm:$0xff] %vm811_vm0, %v1641_v3  ;;  %v892_v42 = vadd.f32 %v891_v31, %v213_v22  ;;  %v333_v43 = vtrunc.f32 %v205_v38  ;;  %v334_v44 = vtrunc.f32 %v206_v39  ;;  %v465_v46 = vpack.c.f32.eXmY %v328_v14, %v332_v40, 312  ;;  %v216_v62 = vld [vmem:[%s1776_s15 + $0x88] sm:$0xff]  ;;  %v218_v5 = vld [vmem:[%s1776_s15 + $0x98] sm:$0xff]  ;;  %s1554_s29 = scalar_lea.vmem %s2036_s20, 4096 }
  0x43   : > { %818 = vst.msk [vmem:[%s1786_s16 + $0x30] sm:$0xff] %vm811_vm0, %v1641_v3  ;;  %819 = vst.msk [vmem:[%s1786_s16 + $0x38] sm:$0xff] %vm811_vm0, %v1641_v3  ;;  %879 = vadd.xlane.f32.xlu0 %v878_v35  ;;  %v881_v47 = vadd.f32 %v204_v33, %v203_v29  ;;  %v455_v48 = vpack.c.f32.eXmY %v327_v16, %v331_v34, 312  ;;  %v347_v50 = vtrunc.f32 %v219_v45  ;;  %v348_v55 = vtrunc.f32 %v220_v49  ;;  %v227_v9 = vld [vmem:[%s1776_s15 + $0xe0] sm:$0xff]  ;;  %v228_v13 = vld [vmem:[%s1776_s15 + $0xe8] sm:$0xff]  ;;  %p1555_p8 = scmp.ne.s32.totalorder %s2036_s20, %s1554_s29  ;;  %p2287_p11 = scmp.ne.s32.totalorder %s2283_s22, 0 }
  0x44   : > { %820 = vst.msk [vmem:[%s1786_s16 + $0x40] sm:$0xff] %vm811_vm0, %v1641_v3  ;;  %821 = vst.msk [vmem:[%s1786_s16 + $0x48] sm:$0xff] %vm811_vm0, %v1641_v3  ;;  %v893_v51 = vadd.f32 %v892_v42, %v214_v23  ;;  %v475_v52 = vpack.c.f32.eXmY %v329_v19, %v333_v43, 312  ;;  %v485_v53 = vpack.c.f32.eXmY %v330_v20, %v334_v44, 312  ;;  %v349_v60 = vtrunc.f32 %v221_v54  ;;  %v229_v14 = vld [vmem:[%s1776_s15 + $0xf0] sm:$0xff]  ;;  %v223_v20 = vld [vmem:[%s1776_s15 + $0xc0] sm:$0xff] }
  0x45   : > { %822 = vst.msk [vmem:[%s1786_s16 + $0x50] sm:$0xff] %vm811_vm0, %v1641_v3  ;;  %823 = vst.msk [vmem:[%s1786_s16 + $0x58] sm:$0xff] %vm811_vm0, %v1641_v3  ;;  %v473_v56 = vpack.c.b8 %v469_v36, %v465_v46  ;;  %v882_v57 = vadd.f32 %v881_v47, %v205_v38  ;;  %v463_v58 = vpack.c.b8 %v459_v32, %v455_v48  ;;  %v350_v1 = vtrunc.f32 %v222_v59  ;;  %v224_v21 = vld [vmem:[%s1776_s15 + $0xc8] sm:$0xff]  ;;  %v230_v26 = vld [vmem:[%s1776_s15 + $0xf8] sm:$0xff]  ;;  %p1556_p0 = pnand %p1555_p8, %p2287_p11  ;;  %s1642_s7 = smov [#allocation5]  }
  0x46   : > { %824 = vst.msk [vmem:[%s1786_s16 + $0x60] sm:$0xff] %vm811_vm0, %v1641_v3  ;;  %825 = vst.msk [vmem:[%s1786_s16 + $0x68] sm:$0xff] %vm811_vm0, %v1641_v3  ;;  %894 = vadd.xlane.f32.xlu1 %v893_v51  ;;  %v483_v63 = vpack.c.b8 %v479_v37, %v475_v52  ;;  %v493_v0 = vpack.c.b8 %v489_v41, %v485_v53  ;;  %v901_v2 = vadd.f32 %v220_v49, %v219_v45  ;;  %v225_v29 = vld [vmem:[%s1776_s15 + $0xd0] sm:$0xff]  ;;  %v226_v30 = vld [vmem:[%s1776_s15 + $0xd8] sm:$0xff]  ;;  %s1558_s8 = sshll.u32 %s1642_s7, 4  ;;  %s1559_s8 = int_to_ptr.vmem [resolvable:$false] %s1558_s8 }
  0x47   : > { %826 = vst.msk [vmem:[%s1786_s16 + $0x70] sm:$0xff] %vm811_vm0, %v1641_v3  ;;  %827 = vst.msk [vmem:[%s1786_s16 + $0x78] sm:$0xff] %vm811_vm0, %v1641_v3  ;;  %v883_v4 = vadd.f32 %v882_v57, %v206_v39  ;;  %v343_v6 = vtrunc.f32 %v215_v61  ;;  %v344_v7 = vtrunc.f32 %v216_v62  ;;  %v346_v11 = vtrunc.f32 %v218_v5  ;;  %v235_v37 = vld [vmem:[%s1776_s15 + $0x120] sm:$0xff]  ;;  %v236_v41 = vld [vmem:[%s1776_s15 + $0x128] sm:$0xff]  ;;  %p1557_p6 = pneg %p1556_p0  ;;  %s1560_s12 = scalar_lea.vmem %s1559_s8, 8192 }
  0x48   : > { %828 = vst.msk [vmem:[%s1786_s16 + $0x80] sm:$0xff] %vm811_vm0, %v1641_v3  ;;  %829 = vst.msk [vmem:[%s1786_s16 + $0x88] sm:$0xff] %vm811_vm0, %v1641_v3  ;;  %v902_v10 = vadd.f32 %v901_v2, %v221_v54  ;;  %v896_v12 = vadd.f32 %v216_v62, %v215_v61  ;;  %v355_v15 = vtrunc.f32 %v227_v9  ;;  %v356_v18 = vtrunc.f32 %v228_v13  ;;  %v237_v46 = vld [vmem:[%s1776_s15 + $0x130] sm:$0xff]  ;;  %v238_v51 = vld [vmem:[%s1776_s15 + $0x138] sm:$0xff]  ;;  %p1561_p13 = scmp.lt.s32.totalorder %s2036_s20, %s1559_s8  ;;  %p1562_p2 = scmp.lt.s32.totalorder %s1560_s12, %s1554_s29 }
  0x49   : > { %830 = vst.msk [vmem:[%s1786_s16 + $0x90] sm:$0xff] %vm811_vm0, %v1641_v3  ;;  %831 = vst.msk [vmem:[%s1786_s16 + $0x98] sm:$0xff] %vm811_vm0, %v1641_v3  ;;  %884 = vadd.xlane.f32.xlu0 %v883_v4  ;;  %v495_v16 = vpack.c.f32.eXmY %v343_v6, %v347_v50, 312  ;;  %v505_v17 = vpack.c.f32.eXmY %v344_v7, %v348_v55, 312  ;;  %v357_v19 = vtrunc.f32 %v229_v14  ;;  %v358_v27 = vtrunc.f32 %v230_v26  ;;  %v231_v53 = vld [vmem:[%s1776_s15 + $0x100] sm:$0xff]  ;;  %v232_v54 = vld [vmem:[%s1776_s15 + $0x108] sm:$0xff] }
  0x4a   : > { %832 = vst.msk [vmem:[%s1786_s16 + $0xa0] sm:$0xff] %vm811_vm0, %v1641_v3  ;;  %833 = vst.msk [vmem:[%s1786_s16 + $0xa8] sm:$0xff] %vm811_vm0, %v1641_v3  ;;  %v903_v22 = vadd.f32 %v902_v10, %v222_v59  ;;  %v525_v24 = vpack.c.f32.eXmY %v346_v11, %v350_v1, 312  ;;  %v911_v28 = vadd.f32 %v228_v13, %v227_v9  ;;  %v351_v31 = vtrunc.f32 %v223_v20  ;;  %v233_v59 = vld [vmem:[%s1776_s15 + $0x110] sm:$0xff]  ;;  %v234_v61 = vld [vmem:[%s1776_s15 + $0x118] sm:$0xff]  ;;  %p1563_p5 = por %p1562_p2, %p1561_p13 }
  0x4b   : > { %834 = vst.msk [vmem:[%s1786_s16 + $0xb0] sm:$0xff] %vm811_vm0, %v1641_v3  ;;  %835 = vst.msk [vmem:[%s1786_s16 + $0xb8] sm:$0xff] %vm811_vm0, %v1641_v3  ;;  %v352_v32 = vtrunc.f32 %v224_v21  ;;  %v353_v34 = vtrunc.f32 %v225_v29  ;;  %v354_v35 = vtrunc.f32 %v226_v30  ;;  %v906_v36 = vadd.f32 %v224_v21, %v223_v20  ;;  %v243_v1 = vld [vmem:[%s1776_s15 + $0x160] sm:$0xff]  ;;  %v244_v2 = vld [vmem:[%s1776_s15 + $0x168] sm:$0xff] }
  0x4c   : > { %836 = vst.msk [vmem:[%s1786_s16 + $0xc0] sm:$0xff] %vm811_vm0, %v1641_v3  ;;  %837 = vst.msk [vmem:[%s1786_s16 + $0xc8] sm:$0xff] %vm811_vm0, %v1641_v3  ;;  %904 = vadd.xlane.f32.xlu1 %v903_v22  ;;  %v912_v38 = vadd.f32 %v911_v28, %v229_v14  ;;  %v499_v39 = vpack.c.f32.eXmY %v351_v31, %v355_v15, 312  ;;  %v363_v42 = vtrunc.f32 %v235_v37  ;;  %v364_v47 = vtrunc.f32 %v236_v41  ;;  %v246_v11 = vld [vmem:[%s1776_s15 + $0x178] sm:$0xff]  ;;  %v239_v13 = vld [vmem:[%s1776_s15 + $0x140] sm:$0xff]  ;;  %p1564_p4 = pnand %p1563_p5, %p1557_p6 }
  0x4d   : > { %838 = vst.msk [vmem:[%s1786_s16 + $0xd0] sm:$0xff] %vm811_vm0, %v1641_v3  ;;  %839 = vst.msk [vmem:[%s1786_s16 + $0xd8] sm:$0xff] %vm811_vm0, %v1641_v3  ;;  %v509_v40 = vpack.c.f32.eXmY %v352_v32, %v356_v18, 312  ;;  %v519_v43 = vpack.c.f32.eXmY %v353_v34, %v357_v19, 312  ;;  %v907_v45 = vadd.f32 %v906_v36, %v225_v29  ;;  %v365_v52 = vtrunc.f32 %v237_v46  ;;  %v240_v14 = vld [vmem:[%s1776_s15 + $0x148] sm:$0xff]  ;;  %v241_v21 = vld [vmem:[%s1776_s15 + $0x150] sm:$0xff] }
  0x4e   : > { %840 = vst.msk [vmem:[%s1786_s16 + $0xe0] sm:$0xff] %vm811_vm0, %v1641_v3  ;;  %841 = vst.msk [vmem:[%s1786_s16 + $0xe8] sm:$0xff] %vm811_vm0, %v1641_v3  ;;  %v529_v44 = vpack.c.f32.eXmY %v354_v35, %v358_v27, 312  ;;  %v913_v48 = vadd.f32 %v912_v38, %v230_v26  ;;  %v503_v49 = vpack.c.b8 %v499_v39, %v495_v16  ;;  %v359_v62 = vtrunc.f32 %v231_v53  ;;  %v242_v22 = vld [vmem:[%s1776_s15 + $0x158] sm:$0xff]  ;;  %v251_v29 = vld [vmem:[%s1776_s15 + $0x1a0] sm:$0xff] }
  0x4f   : > { %842 = vst.msk [vmem:[%s1786_s16 + $0xf0] sm:$0xff] %vm811_vm0, %v1641_v3  ;;  %843 = vst.msk [vmem:[%s1786_s16 + $0xf8] sm:$0xff] %vm811_vm0, %v1641_v3  ;;  %v217_v3 = vld [vmem:[%s1776_s15 + $0x90] sm:$0xff]  ;;  %v513_v50 = vpack.c.b8 %v509_v40, %v505_v17  ;;  %v908_v57 = vadd.f32 %v907_v45, %v226_v30  ;;  %v916_v4 = vadd.f32 %v232_v54, %v231_v53  ;;  %v371_v6 = vtrunc.f32 %v243_v1  ;;  %v247_v45 = vld [vmem:[%s1776_s15 + $0x180] sm:$0xff] }
  0x50   : > { %776 = vst [vmem:[%s1890_s18 + $0x8] sm:$0xff] %v473_v56  ;;  %775 = vst [vmem:[%s1890_s18] sm:$0xff] %v463_v58  ;;  %v345_v8 = vtrunc.f32 %v217_v3  ;;  %v897_v25 = vadd.f32 %v896_v12, %v217_v3  ;;  %v533_v56 = vpack.c.b8 %v529_v44, %v525_v24  ;;  %v366_v58 = vtrunc.f32 %v238_v51  ;;  %914 = vadd.xlane.f32.xlu1 %v913_v48  ;;  %v253_v38 = vld [vmem:[%s1776_s15 + $0x1b0] sm:$0xff]  ;;  %v250_v53 = vld [vmem:[%s1776_s15 + $0x198] sm:$0xff] }
  0x51   : > { %777 = vst [vmem:[%s1890_s18 + $0x10] sm:$0xff] %v483_v63  ;;  %778 = vst [vmem:[%s1890_s18 + $0x18] sm:$0xff] %v493_v0  ;;  %v360_v63 = vtrunc.f32 %v232_v54  ;;  %v361_v0 = vtrunc.f32 %v233_v59  ;;  %v362_v3 = vtrunc.f32 %v234_v61  ;;  %v372_v7 = vtrunc.f32 %v244_v2 }
  0x52   : > { %v515_v23 = vpack.c.f32.eXmY %v345_v8, %v349_v60, 312  ;;  %v898_v33 = vadd.f32 %v897_v25, %v218_v5  ;;  %779 = vst [vmem:[%s1890_s18 + $0x20] sm:$0xff] %v503_v49  ;;  %780 = vst [vmem:[%s1890_s18 + $0x28] sm:$0xff] %v513_v50  ;;  %v921_v60 = vadd.f32 %v236_v41, %v235_v37  ;;  %v245_v5 = vld [vmem:[%s1776_s15 + $0x170] sm:$0xff]  ;;  %v374_v18 = vtrunc.f32 %v246_v11 }
  0x53   : > { %782 = vst [vmem:[%s1890_s18 + $0x38] sm:$0xff] %v533_v56  ;;  %v535_v9 = vpack.c.f32.eXmY %v359_v62, %v363_v42, 312  ;;  %v545_v10 = vpack.c.f32.eXmY %v360_v63, %v364_v47, 312  ;;  %v373_v12 = vtrunc.f32 %v245_v5  ;;  %v917_v17 = vadd.f32 %v916_v4, %v233_v59 }
  0x54   : > { %899 = vadd.xlane.f32.xlu0 %v898_v33  ;;  %v523_v55 = vpack.c.b8 %v519_v43, %v515_v23  ;;  %v922_v8 = vadd.f32 %v921_v60, %v237_v46  ;;  %v555_v15 = vpack.c.f32.eXmY %v361_v0, %v365_v52, 312  ;;  %v565_v16 = vpack.c.f32.eXmY %v362_v3, %v366_v58, 312  ;;  %v252_v33 = vld [vmem:[%s1776_s15 + $0x1a8] sm:$0xff]  ;;  %v254_v43 = vld [vmem:[%s1776_s15 + $0x1b8] sm:$0xff] }
  0x55   : > { %v931_v20 = vadd.f32 %v244_v2, %v243_v1  ;;  %v367_v23 = vtrunc.f32 %v239_v13  ;;  %v368_v24 = vtrunc.f32 %v240_v14  ;;  %v918_v25 = vadd.f32 %v917_v17, %v234_v61  ;;  %v248_v46 = vld [vmem:[%s1776_s15 + $0x188] sm:$0xff]  ;;  %v261_v61 = vld [vmem:[%s1776_s15 + $0x1f0] sm:$0xff]  ;;  %v262_v3 = vld [vmem:[%s1776_s15 + $0x1f8] sm:$0xff] }
  0x56   : > { %781 = vst [vmem:[%s1890_s18 + $0x30] sm:$0xff] %v523_v55  ;;  %v923_v19 = vadd.f32 %v922_v8, %v238_v51  ;;  %v369_v26 = vtrunc.f32 %v241_v21  ;;  %v370_v27 = vtrunc.f32 %v242_v22  ;;  %v926_v28 = vadd.f32 %v240_v14, %v239_v13  ;;  %v249_v51 = vld [vmem:[%s1776_s15 + $0x190] sm:$0xff]  ;;  %v260_v58 = vld [vmem:[%s1776_s15 + $0x1e8] sm:$0xff]  ;;  %v258_v14 = vld [vmem:[%s1776_s15 + $0x1d8] sm:$0xff] }
  0x57   : > { %v932_v30 = vadd.f32 %v931_v20, %v245_v5  ;;  %v539_v31 = vpack.c.f32.eXmY %v367_v23, %v371_v6, 312  ;;  %v549_v32 = vpack.c.f32.eXmY %v368_v24, %v372_v7, 312  ;;  %v379_v34 = vtrunc.f32 %v251_v29  ;;  %v255_v5 = vld [vmem:[%s1776_s15 + $0x1c0] sm:$0xff]  ;;  %v256_v6 = vld [vmem:[%s1776_s15 + $0x1c8] sm:$0xff]  ;;  %v257_v13 = vld [vmem:[%s1776_s15 + $0x1d0] sm:$0xff] }
  0x58   : > { %909 = vadd.xlane.f32.xlu0 %v908_v57  ;;  %924 = vadd.xlane.f32.xlu1 %v923_v19  ;;  %v559_v35 = vpack.c.f32.eXmY %v369_v26, %v373_v12, 312  ;;  %v569_v36 = vpack.c.f32.eXmY %v370_v27, %v374_v18, 312  ;;  %v927_v37 = vadd.f32 %v926_v28, %v241_v21  ;;  %v380_v39 = vtrunc.f32 %v252_v33  ;;  %v259_v57 = vld [vmem:[%s1776_s15 + $0x1e0] sm:$0xff] }
  0x59   : > { %v933_v40 = vadd.f32 %v932_v30, %v246_v11  ;;  %v543_v41 = vpack.c.b8 %v539_v31, %v535_v9  ;;  %v553_v42 = vpack.c.b8 %v549_v32, %v545_v10  ;;  %v381_v44 = vtrunc.f32 %v253_v38  ;;  %v267_v21 = vld [vmem:[%s1776_s15 + $0x220] sm:$0xff]  ;;  %v269_v30 = vld [vmem:[%s1776_s15 + $0x230] sm:$0xff] }
  0x5a   : > { %v563_v47 = vpack.c.b8 %v559_v35, %v555_v15  ;;  %v573_v48 = vpack.c.b8 %v569_v36, %v565_v16  ;;  %v928_v49 = vadd.f32 %v927_v37, %v242_v22  ;;  %v382_v50 = vtrunc.f32 %v254_v43  ;;  %v270_v35 = vld [vmem:[%s1776_s15 + $0x238] sm:$0xff]  ;;  %v263_v37 = vld [vmem:[%s1776_s15 + $0x200] sm:$0xff] }
  0x5b   : > { %783 = vst [vmem:[%s1890_s18 + $0x40] sm:$0xff] %v543_v41  ;;  %784 = vst [vmem:[%s1890_s18 + $0x48] sm:$0xff] %v553_v42  ;;  %v941_v52 = vadd.f32 %v252_v33, %v251_v29  ;;  %v375_v54 = vtrunc.f32 %v247_v45  ;;  %v376_v55 = vtrunc.f32 %v248_v46  ;;  %v377_v56 = vtrunc.f32 %v249_v51 }
  0x5c   : > { %919 = vadd.xlane.f32.xlu0 %v918_v25  ;;  %934 = vadd.xlane.f32.xlu1 %v933_v40  ;;  %785 = vst [vmem:[%s1890_s18 + $0x50] sm:$0xff] %v563_v47  ;;  %786 = vst [vmem:[%s1890_s18 + $0x58] sm:$0xff] %v573_v48  ;;  %v378_v59 = vtrunc.f32 %v250_v53  ;;  %v936_v60 = vadd.f32 %v248_v46, %v247_v45  ;;  %v387_v62 = vtrunc.f32 %v259_v57  ;;  %v388_v63 = vtrunc.f32 %v260_v58  ;;  %v268_v25 = vld [vmem:[%s1776_s15 + $0x228] sm:$0xff]  ;;  %v266_v45 = vld [vmem:[%s1776_s15 + $0x218] sm:$0xff] }
  0x5d   : > { %v942_v0 = vadd.f32 %v941_v52, %v253_v38  ;;  %v575_v1 = vpack.c.f32.eXmY %v375_v54, %v379_v34, 312  ;;  %v585_v2 = vpack.c.f32.eXmY %v376_v55, %v380_v39, 312  ;;  %v389_v4 = vtrunc.f32 %v261_v61  ;;  %v264_v38 = vld [vmem:[%s1776_s15 + $0x208] sm:$0xff] }
  0x5e   : > { %v595_v7 = vpack.c.f32.eXmY %v377_v56, %v381_v44, 312  ;;  %v605_v8 = vpack.c.f32.eXmY %v378_v59, %v382_v50, 312  ;;  %v937_v9 = vadd.f32 %v936_v60, %v249_v51  ;;  %v390_v10 = vtrunc.f32 %v262_v3  ;;  %v276_v50 = vld [vmem:[%s1776_s15 + $0x268] sm:$0xff]  ;;  %v278_v59 = vld [vmem:[%s1776_s15 + $0x278] sm:$0xff] }
  0x5f   : > { %v943_v11 = vadd.f32 %v942_v0, %v254_v43  ;;  %v951_v12 = vadd.f32 %v260_v58, %v259_v57  ;;  %v383_v15 = vtrunc.f32 %v255_v5  ;;  %v384_v16 = vtrunc.f32 %v256_v6  ;;  %v265_v43 = vld [vmem:[%s1776_s15 + $0x210] sm:$0xff] }
  0x60   : > { %929 = vadd.xlane.f32.xlu0 %v928_v49  ;;  %v938_v17 = vadd.f32 %v937_v9, %v250_v53  ;;  %v385_v18 = vtrunc.f32 %v257_v13  ;;  %v386_v19 = vtrunc.f32 %v258_v14  ;;  %v946_v20 = vadd.f32 %v256_v6, %v255_v5  ;;  %v275_v49 = vld [vmem:[%s1776_s15 + $0x260] sm:$0xff]  ;;  %v277_v53 = vld [vmem:[%s1776_s15 + $0x270] sm:$0xff]  ;;  %v274_v6 = vld [vmem:[%s1776_s15 + $0x258] sm:$0xff] }
  0x61   : > { %944 = vadd.xlane.f32.xlu1 %v943_v11  ;;  %v952_v22 = vadd.f32 %v951_v12, %v261_v61  ;;  %v579_v23 = vpack.c.f32.eXmY %v383_v15, %v387_v62, 312  ;;  %v589_v24 = vpack.c.f32.eXmY %v384_v16, %v388_v63, 312  ;;  %v395_v26 = vtrunc.f32 %v267_v21  ;;  %v271_v61 = vld [vmem:[%s1776_s15 + $0x240] sm:$0xff]  ;;  %v272_v62 = vld [vmem:[%s1776_s15 + $0x248] sm:$0xff]  ;;  %v273_v5 = vld [vmem:[%s1776_s15 + $0x250] sm:$0xff] }
  0x62   : > { %v599_v27 = vpack.c.f32.eXmY %v385_v18, %v389_v4, 312  ;;  %v609_v28 = vpack.c.f32.eXmY %v386_v19, %v390_v10, 312  ;;  %v947_v29 = vadd.f32 %v946_v20, %v257_v13  ;;  %v396_v31 = vtrunc.f32 %v268_v25  ;;  %v283_v13 = vld [vmem:[%s1776_s15 + $0x2a0] sm:$0xff] }
  0x63   : > { %v953_v32 = vadd.f32 %v952_v22, %v262_v3  ;;  %v583_v33 = vpack.c.b8 %v579_v23, %v575_v1  ;;  %v593_v34 = vpack.c.b8 %v589_v24, %v585_v2  ;;  %v397_v36 = vtrunc.f32 %v269_v30  ;;  %v285_v22 = vld [vmem:[%s1776_s15 + $0x2b0] sm:$0xff] }
  0x64   : > { %939 = vadd.xlane.f32.xlu0 %v938_v17  ;;  %v603_v39 = vpack.c.b8 %v599_v27, %v595_v7  ;;  %v613_v40 = vpack.c.b8 %v609_v28, %v605_v8  ;;  %v948_v41 = vadd.f32 %v947_v29, %v258_v14  ;;  %v398_v42 = vtrunc.f32 %v270_v35  ;;  %v284_v17 = vld [vmem:[%s1776_s15 + $0x2a8] sm:$0xff]  ;;  %v286_v27 = vld [vmem:[%s1776_s15 + $0x2b8] sm:$0xff]  ;;  %v279_v29 = vld [vmem:[%s1776_s15 + $0x280] sm:$0xff] }
  0x65   : > { %954 = vadd.xlane.f32.xlu1 %v953_v32  ;;  %787 = vst [vmem:[%s1890_s18 + $0x60] sm:$0xff] %v583_v33  ;;  %788 = vst [vmem:[%s1890_s18 + $0x68] sm:$0xff] %v593_v34  ;;  %v961_v44 = vadd.f32 %v268_v25, %v267_v21  ;;  %v391_v46 = vtrunc.f32 %v263_v37  ;;  %v392_v47 = vtrunc.f32 %v264_v38  ;;  %v393_v48 = vtrunc.f32 %v265_v43 }
  0x66   : > { %789 = vst [vmem:[%s1890_s18 + $0x70] sm:$0xff] %v603_v39  ;;  %790 = vst [vmem:[%s1890_s18 + $0x78] sm:$0xff] %v613_v40  ;;  %v394_v51 = vtrunc.f32 %v266_v45  ;;  %v956_v52 = vadd.f32 %v264_v38, %v263_v37  ;;  %v403_v54 = vtrunc.f32 %v275_v49  ;;  %v404_v55 = vtrunc.f32 %v276_v50  ;;  %v282_v37 = vld [vmem:[%s1776_s15 + $0x298] sm:$0xff] }
  0x67   : > { %v962_v56 = vadd.f32 %v961_v44, %v269_v30  ;;  %v615_v57 = vpack.c.f32.eXmY %v391_v46, %v395_v26, 312  ;;  %v625_v58 = vpack.c.f32.eXmY %v392_v47, %v396_v31, 312  ;;  %v405_v60 = vtrunc.f32 %v277_v53  ;;  %v280_v30 = vld [vmem:[%s1776_s15 + $0x288] sm:$0xff] }
  0x68   : > { %949 = vadd.xlane.f32.xlu0 %v948_v41  ;;  %v635_v63 = vpack.c.f32.eXmY %v393_v48, %v397_v36, 312  ;;  %v645_v0 = vpack.c.f32.eXmY %v394_v51, %v398_v42, 312  ;;  %v957_v1 = vadd.f32 %v956_v52, %v265_v43  ;;  %v406_v2 = vtrunc.f32 %v278_v59  ;;  %v291_v41 = vld [vmem:[%s1776_s15 + $0x2e0] sm:$0xff]  ;;  %v292_v42 = vld [vmem:[%s1776_s15 + $0x2e8] sm:$0xff]  ;;  %v294_v51 = vld [vmem:[%s1776_s15 + $0x2f8] sm:$0xff] }
  0x69   : > { %v963_v3 = vadd.f32 %v962_v56, %v270_v35  ;;  %v971_v4 = vadd.f32 %v276_v50, %v275_v49  ;;  %v399_v7 = vtrunc.f32 %v271_v61  ;;  %v400_v8 = vtrunc.f32 %v272_v62  ;;  %v281_v35 = vld [vmem:[%s1776_s15 + $0x290] sm:$0xff] }
  0x6a   : > { %v958_v9 = vadd.f32 %v957_v1, %v266_v45  ;;  %v401_v10 = vtrunc.f32 %v273_v5  ;;  %v402_v11 = vtrunc.f32 %v274_v6  ;;  %v966_v12 = vadd.f32 %v272_v62, %v271_v61  ;;  %v293_v45 = vld [vmem:[%s1776_s15 + $0x2f0] sm:$0xff]  ;;  %v290_v62 = vld [vmem:[%s1776_s15 + $0x2d8] sm:$0xff] }
  0x6b   : > { %964 = vadd.xlane.f32.xlu1 %v963_v3  ;;  %v972_v14 = vadd.f32 %v971_v4, %v277_v53  ;;  %v619_v15 = vpack.c.f32.eXmY %v399_v7, %v403_v54, 312  ;;  %v629_v16 = vpack.c.f32.eXmY %v400_v8, %v404_v55, 312  ;;  %v411_v18 = vtrunc.f32 %v283_v13  ;;  %v287_v53 = vld [vmem:[%s1776_s15 + $0x2c0] sm:$0xff]  ;;  %v288_v54 = vld [vmem:[%s1776_s15 + $0x2c8] sm:$0xff]  ;;  %v289_v61 = vld [vmem:[%s1776_s15 + $0x2d0] sm:$0xff] }
  0x6c   : > { %959 = vadd.xlane.f32.xlu0 %v958_v9  ;;  %v639_v19 = vpack.c.f32.eXmY %v401_v10, %v405_v60, 312  ;;  %v649_v20 = vpack.c.f32.eXmY %v402_v11, %v406_v2, 312  ;;  %v967_v21 = vadd.f32 %v966_v12, %v273_v5  ;;  %v412_v23 = vtrunc.f32 %v284_v17  ;;  %v299_v5 = vld [vmem:[%s1776_s15 + $0x320] sm:$0xff]  ;;  %v300_v9 = vld [vmem:[%s1776_s15 + $0x328] sm:$0xff] }
  0x6d   : > { %v973_v24 = vadd.f32 %v972_v14, %v278_v59  ;;  %v623_v25 = vpack.c.b8 %v619_v15, %v615_v57  ;;  %v633_v26 = vpack.c.b8 %v629_v16, %v625_v58  ;;  %v413_v28 = vtrunc.f32 %v285_v22  ;;  %v301_v14 = vld [vmem:[%s1776_s15 + $0x330] sm:$0xff] }
  0x6e   : > { %v643_v31 = vpack.c.b8 %v639_v19, %v635_v63  ;;  %v653_v32 = vpack.c.b8 %v649_v20, %v645_v0  ;;  %v968_v33 = vadd.f32 %v967_v21, %v274_v6  ;;  %v414_v34 = vtrunc.f32 %v286_v27  ;;  %v302_v19 = vld [vmem:[%s1776_s15 + $0x338] sm:$0xff]  ;;  %v295_v21 = vld [vmem:[%s1776_s15 + $0x300] sm:$0xff] }
  0x6f   : > { %974 = vadd.xlane.f32.xlu1 %v973_v24  ;;  %791 = vst [vmem:[%s1890_s18 + $0x80] sm:$0xff] %v623_v25  ;;  %792 = vst [vmem:[%s1890_s18 + $0x88] sm:$0xff] %v633_v26  ;;  %v981_v36 = vadd.f32 %v284_v17, %v283_v13  ;;  %v407_v38 = vtrunc.f32 %v279_v29  ;;  %v408_v39 = vtrunc.f32 %v280_v30  ;;  %v409_v40 = vtrunc.f32 %v281_v35 }
  0x70   : > { %793 = vst [vmem:[%s1890_s18 + $0x90] sm:$0xff] %v643_v31  ;;  %794 = vst [vmem:[%s1890_s18 + $0x98] sm:$0xff] %v653_v32  ;;  %969 = vadd.xlane.f32.xlu0 %v968_v33  ;;  %v410_v43 = vtrunc.f32 %v282_v37  ;;  %v976_v44 = vadd.f32 %v280_v30, %v279_v29  ;;  %v419_v46 = vtrunc.f32 %v291_v41  ;;  %v420_v47 = vtrunc.f32 %v292_v42  ;;  %v298_v29 = vld [vmem:[%s1776_s15 + $0x318] sm:$0xff]  ;;  %v307_v33 = vld [vmem:[%s1776_s15 + $0x360] sm:$0xff] }
  0x71   : > { %v982_v48 = vadd.f32 %v981_v36, %v285_v22  ;;  %v655_v49 = vpack.c.f32.eXmY %v407_v38, %v411_v18, 312  ;;  %v665_v50 = vpack.c.f32.eXmY %v408_v39, %v412_v23, 312  ;;  %v421_v52 = vtrunc.f32 %v293_v45  ;;  %v296_v22 = vld [vmem:[%s1776_s15 + $0x308] sm:$0xff] }
  0x72   : > { %v675_v55 = vpack.c.f32.eXmY %v409_v40, %v413_v28, 312  ;;  %v685_v56 = vpack.c.f32.eXmY %v410_v43, %v414_v34, 312  ;;  %v977_v57 = vadd.f32 %v976_v44, %v281_v35  ;;  %v422_v58 = vtrunc.f32 %v294_v51  ;;  %v308_v34 = vld [vmem:[%s1776_s15 + $0x368] sm:$0xff]  ;;  %v310_v43 = vld [vmem:[%s1776_s15 + $0x378] sm:$0xff] }
  0x73   : > { %v983_v59 = vadd.f32 %v982_v48, %v286_v27  ;;  %v991_v60 = vadd.f32 %v292_v42, %v291_v41  ;;  %v415_v63 = vtrunc.f32 %v287_v53  ;;  %v416_v0 = vtrunc.f32 %v288_v54  ;;  %v297_v27 = vld [vmem:[%s1776_s15 + $0x310] sm:$0xff] }
  0x74   : > { %v978_v1 = vadd.f32 %v977_v57, %v282_v37  ;;  %v417_v2 = vtrunc.f32 %v289_v61  ;;  %v418_v3 = vtrunc.f32 %v290_v62  ;;  %v986_v4 = vadd.f32 %v288_v54, %v287_v53  ;;  %v309_v37 = vld [vmem:[%s1776_s15 + $0x370] sm:$0xff]  ;;  %v306_v54 = vld [vmem:[%s1776_s15 + $0x358] sm:$0xff] }
  0x75   : > { %984 = vadd.xlane.f32.xlu1 %v983_v59  ;;  %v992_v6 = vadd.f32 %v991_v60, %v293_v45  ;;  %v659_v7 = vpack.c.f32.eXmY %v415_v63, %v419_v46, 312  ;;  %v669_v8 = vpack.c.f32.eXmY %v416_v0, %v420_v47, 312  ;;  %v427_v10 = vtrunc.f32 %v299_v5  ;;  %v303_v45 = vld [vmem:[%s1776_s15 + $0x340] sm:$0xff]  ;;  %v304_v46 = vld [vmem:[%s1776_s15 + $0x348] sm:$0xff]  ;;  %v305_v53 = vld [vmem:[%s1776_s15 + $0x350] sm:$0xff] }
  0x76   : > { %979 = vadd.xlane.f32.xlu0 %v978_v1  ;;  %v679_v11 = vpack.c.f32.eXmY %v417_v2, %v421_v52, 312  ;;  %v689_v12 = vpack.c.f32.eXmY %v418_v3, %v422_v58, 312  ;;  %v987_v13 = vadd.f32 %v986_v4, %v289_v61  ;;  %v428_v15 = vtrunc.f32 %v300_v9  ;;  %v315_v61 = vld [vmem:[%s1776_s15 + $0x3a0] sm:$0xff]  ;;  %v316_v1 = vld [vmem:[%s1776_s15 + $0x3a8] sm:$0xff] }
  0x77   : > { %v993_v16 = vadd.f32 %v992_v6, %v294_v51  ;;  %v663_v17 = vpack.c.b8 %v659_v7, %v655_v49  ;;  %v673_v18 = vpack.c.b8 %v669_v8, %v665_v50  ;;  %v429_v20 = vtrunc.f32 %v301_v14  ;;  %v317_v6 = vld [vmem:[%s1776_s15 + $0x3b0] sm:$0xff] }
  0x78   : > { %v683_v23 = vpack.c.b8 %v679_v11, %v675_v55  ;;  %v693_v24 = vpack.c.b8 %v689_v12, %v685_v56  ;;  %v988_v25 = vadd.f32 %v987_v13, %v290_v62  ;;  %v430_v26 = vtrunc.f32 %v302_v19  ;;  %v318_v11 = vld [vmem:[%s1776_s15 + $0x3b8] sm:$0xff]  ;;  %v311_v13 = vld [vmem:[%s1776_s15 + $0x380] sm:$0xff] }
  0x79   : > { %994 = vadd.xlane.f32.xlu1 %v993_v16  ;;  %795 = vst [vmem:[%s1890_s18 + $0xa0] sm:$0xff] %v663_v17  ;;  %796 = vst [vmem:[%s1890_s18 + $0xa8] sm:$0xff] %v673_v18  ;;  %v1001_v28 = vadd.f32 %v300_v9, %v299_v5  ;;  %v423_v30 = vtrunc.f32 %v295_v21  ;;  %v424_v31 = vtrunc.f32 %v296_v22  ;;  %v425_v32 = vtrunc.f32 %v297_v27 }
  0x7a   : > { %797 = vst [vmem:[%s1890_s18 + $0xb0] sm:$0xff] %v683_v23  ;;  %798 = vst [vmem:[%s1890_s18 + $0xb8] sm:$0xff] %v693_v24  ;;  %989 = vadd.xlane.f32.xlu0 %v988_v25  ;;  %v426_v35 = vtrunc.f32 %v298_v29  ;;  %v996_v36 = vadd.f32 %v296_v22, %v295_v21  ;;  %v435_v38 = vtrunc.f32 %v307_v33  ;;  %v436_v39 = vtrunc.f32 %v308_v34  ;;  %v314_v21 = vld [vmem:[%s1776_s15 + $0x398] sm:$0xff]  ;;  %v323_v25 = vld [vmem:[%s1776_s15 + $0x3e0] sm:$0xff] }
  0x7b   : > { %v1002_v40 = vadd.f32 %v1001_v28, %v301_v14  ;;  %v695_v41 = vpack.c.f32.eXmY %v423_v30, %v427_v10, 312  ;;  %v705_v42 = vpack.c.f32.eXmY %v424_v31, %v428_v15, 312  ;;  %v437_v44 = vtrunc.f32 %v309_v37  ;;  %v312_v14 = vld [vmem:[%s1776_s15 + $0x388] sm:$0xff] }
  0x7c   : > { %v715_v47 = vpack.c.f32.eXmY %v425_v32, %v429_v20, 312  ;;  %v725_v48 = vpack.c.f32.eXmY %v426_v35, %v430_v26, 312  ;;  %v997_v49 = vadd.f32 %v996_v36, %v297_v27  ;;  %v438_v50 = vtrunc.f32 %v310_v43  ;;  %v324_v26 = vld [vmem:[%s1776_s15 + $0x3e8] sm:$0xff]  ;;  %v326_v35 = vld [vmem:[%s1776_s15 + $0x3f8] sm:$0xff] }
  0x7d   : > { %v1003_v51 = vadd.f32 %v1002_v40, %v302_v19  ;;  %v1011_v52 = vadd.f32 %v308_v34, %v307_v33  ;;  %v431_v55 = vtrunc.f32 %v303_v45  ;;  %v432_v56 = vtrunc.f32 %v304_v46  ;;  %v313_v19 = vld [vmem:[%s1776_s15 + $0x390] sm:$0xff] }
  0x7e   : > { %v998_v57 = vadd.f32 %v997_v49, %v298_v29  ;;  %v433_v58 = vtrunc.f32 %v305_v53  ;;  %v434_v59 = vtrunc.f32 %v306_v54  ;;  %v1006_v60 = vadd.f32 %v304_v46, %v303_v45  ;;  %v325_v29 = vld [vmem:[%s1776_s15 + $0x3f0] sm:$0xff]  ;;  %v322_v46 = vld [vmem:[%s1776_s15 + $0x3d8] sm:$0xff] }
  0x7f   : > { %1004 = vadd.xlane.f32.xlu1 %v1003_v51  ;;  %v1012_v62 = vadd.f32 %v1011_v52, %v309_v37  ;;  %v699_v63 = vpack.c.f32.eXmY %v431_v55, %v435_v38, 312  ;;  %v709_v0 = vpack.c.f32.eXmY %v432_v56, %v436_v39, 312  ;;  %v443_v2 = vtrunc.f32 %v315_v61  ;;  %v319_v37 = vld [vmem:[%s1776_s15 + $0x3c0] sm:$0xff]  ;;  %v320_v38 = vld [vmem:[%s1776_s15 + $0x3c8] sm:$0xff]  ;;  %v321_v45 = vld [vmem:[%s1776_s15 + $0x3d0] sm:$0xff] }
  0x80   : > { %999 = vadd.xlane.f32.xlu0 %v998_v57  ;;  %v719_v3 = vpack.c.f32.eXmY %v433_v58, %v437_v44, 312  ;;  %v729_v4 = vpack.c.f32.eXmY %v434_v59, %v438_v50, 312  ;;  %v1007_v5 = vadd.f32 %v1006_v60, %v305_v53  ;;  %v444_v7 = vtrunc.f32 %v316_v1 }
  0x81   : > { %v1013_v8 = vadd.f32 %v1012_v62, %v310_v43  ;;  %v703_v9 = vpack.c.b8 %v699_v63, %v695_v41  ;;  %v713_v10 = vpack.c.b8 %v709_v0, %v705_v42  ;;  %v445_v12 = vtrunc.f32 %v317_v6 }
  0x82   : > { %v723_v15 = vpack.c.b8 %v719_v3, %v715_v47  ;;  %v733_v16 = vpack.c.b8 %v729_v4, %v725_v48  ;;  %v1008_v17 = vadd.f32 %v1007_v5, %v306_v54  ;;  %v446_v18 = vtrunc.f32 %v318_v11 }
  0x83   : > { %1014 = vadd.xlane.f32.xlu1 %v1013_v8  ;;  %799 = vst [vmem:[%s1890_s18 + $0xc0] sm:$0xff] %v703_v9  ;;  %800 = vst [vmem:[%s1890_s18 + $0xc8] sm:$0xff] %v713_v10  ;;  %v1021_v20 = vadd.f32 %v316_v1, %v315_v61  ;;  %v439_v22 = vtrunc.f32 %v311_v13  ;;  %v440_v23 = vtrunc.f32 %v312_v14  ;;  %v441_v24 = vtrunc.f32 %v313_v19 }
  0x84   : > { %801 = vst [vmem:[%s1890_s18 + $0xd0] sm:$0xff] %v723_v15  ;;  %802 = vst [vmem:[%s1890_s18 + $0xd8] sm:$0xff] %v733_v16  ;;  %1009 = vadd.xlane.f32.xlu0 %v1008_v17  ;;  %v442_v27 = vtrunc.f32 %v314_v21  ;;  %v1016_v28 = vadd.f32 %v312_v14, %v311_v13  ;;  %v451_v30 = vtrunc.f32 %v323_v25  ;;  %v452_v31 = vtrunc.f32 %v324_v26 }
  0x85   : > { %v1022_v32 = vadd.f32 %v1021_v20, %v317_v6  ;;  %v735_v33 = vpack.c.f32.eXmY %v439_v22, %v443_v2, 312  ;;  %v745_v34 = vpack.c.f32.eXmY %v440_v23, %v444_v7, 312  ;;  %v453_v36 = vtrunc.f32 %v325_v29 }
  0x86   : > { %v755_v39 = vpack.c.f32.eXmY %v441_v24, %v445_v12, 312  ;;  %v765_v40 = vpack.c.f32.eXmY %v442_v27, %v446_v18, 312  ;;  %v1017_v41 = vadd.f32 %v1016_v28, %v313_v19  ;;  %v454_v42 = vtrunc.f32 %v326_v35 }
  0x87   : > { %v1023_v43 = vadd.f32 %v1022_v32, %v318_v11  ;;  %v1031_v44 = vadd.f32 %v324_v26, %v323_v25  ;;  %v447_v47 = vtrunc.f32 %v319_v37  ;;  %v448_v48 = vtrunc.f32 %v320_v38 }
  0x88   : > { %v1018_v49 = vadd.f32 %v1017_v41, %v314_v21  ;;  %v449_v50 = vtrunc.f32 %v321_v45  ;;  %v450_v51 = vtrunc.f32 %v322_v46  ;;  %v1026_v52 = vadd.f32 %v320_v38, %v319_v37 }
  0x89   : > { %1024 = vadd.xlane.f32.xlu1 %v1023_v43  ;;  %v1032_v53 = vadd.f32 %v1031_v44, %v325_v29  ;;  %v739_v54 = vpack.c.f32.eXmY %v447_v47, %v451_v30, 312  ;;  %v749_v55 = vpack.c.f32.eXmY %v448_v48, %v452_v31, 312 }
  0x8a   : > { %1019 = vadd.xlane.f32.xlu0 %v1018_v49  ;;  %v759_v56 = vpack.c.f32.eXmY %v449_v50, %v453_v36, 312  ;;  %v769_v57 = vpack.c.f32.eXmY %v450_v51, %v454_v42, 312  ;;  %v1027_v58 = vadd.f32 %v1026_v52, %v321_v45 }
  0x8b   : > { %v1033_v59 = vadd.f32 %v1032_v53, %v326_v35  ;;  %v743_v60 = vpack.c.b8 %v739_v54, %v735_v33  ;;  %v753_v61 = vpack.c.b8 %v749_v55, %v745_v34 }
  0x8c   : > { %v763_v62 = vpack.c.b8 %v759_v56, %v755_v39  ;;  %v773_v63 = vpack.c.b8 %v769_v57, %v765_v40  ;;  %v1028_v0 = vadd.f32 %v1027_v58, %v322_v46 }
  0x8d   : > { %1034 = vadd.xlane.f32.xlu1 %v1033_v59  ;;  %803 = vst [vmem:[%s1890_s18 + $0xe0] sm:$0xff] %v743_v60  ;;  %804 = vst [vmem:[%s1890_s18 + $0xe8] sm:$0xff] %v753_v61 }
  0x8e   : > { %805 = vst [vmem:[%s1890_s18 + $0xf0] sm:$0xff] %v763_v62  ;;  %806 = vst [vmem:[%s1890_s18 + $0xf8] sm:$0xff] %v773_v63  ;;  %1029 = vadd.xlane.f32.xlu0 %v1028_v0 }
  0x8f   : > { %1567 = shalt.err (!%p1564_p4)
}
  0x90   : > { %s1568_s15 = scalar_lea.hbm %s2034_s27, 4096  ;;  %s1572_s5 = scalar_lea.hbm %s2278_s1, 8192 }
  0x91   : > { %p1569_p7 = scmp.ne.s32.totalorder %s2034_s27, %s1568_s15  ;;  %p1573_p1 = scmp.lt.u32.totalorder %s2034_s27, %s2278_s1 }
  0x92   : > { %p1574_p3 = scmp.lt.u32.totalorder %s1572_s5, %s1568_s15  ;;  %p1576_p8 = scmp.lt.u32.totalorder %s1568_s15, %s2034_s27 }
  0x93   : > { %p1570_p10 = pnand %p1569_p7, %p2287_p11 }
  0x94   : > { %p1575_p9 = por %p1574_p3, %p1573_p1 }
  0x95   : > { %p1571_p12 = pneg %p1570_p10 }
  0x96   : > { %p1577_p0 = por %p1576_p8, %p1575_p9 }
  0x98   : > { %p1578_p6 = pnand %p1577_p0, %p1571_p12 }
  0x9a   : > { %1581 = shalt.err (!%p1578_p6)
}
  0x9b   : > { %s1643_s18 = smov 512   ;;  %s1644_s19 = smov 32   ;;  %v846_v1 = vld [vmem:[%s1786_s16 + $0x10] sm:$0xff]  ;;  %v844_v2 = vld [vmem:[%s1786_s16] sm:$0xff]  ;;  %v847_v7 = vld [vmem:[%s1786_s16 + $0x18] sm:$0xff] }
  0x9c   : > { %1395 = dma.vmem_to_hbm [thread:$0]  (%p2287_p11), %s2036_s20, 4096, %s2034_s27, %s1233_s28, %s1643_s18, %s1643_s18, %s1644_s19  }
  0x9d   : > { %v845_v10 = vld [vmem:[%s1786_s16 + $0x8] sm:$0xff]  ;;  %v848_v16 = vld [vmem:[%s1786_s16 + $0x20] sm:$0xff]  ;;  %v851_v23 = vld [vmem:[%s1786_s16 + $0x38] sm:$0xff] }
  0x9e   : > { %v849_v13 = vld [vmem:[%s1786_s16 + $0x28] sm:$0xff]  ;;  %v850_v25 = vld [vmem:[%s1786_s16 + $0x30] sm:$0xff]  ;;  %v852_v35 = vld [vmem:[%s1786_s16 + $0x40] sm:$0xff] }
  0x9f   : > { %v853_v33 = vld [vmem:[%s1786_s16 + $0x48] sm:$0xff]  ;;  %v855_v44 = vld [vmem:[%s1786_s16 + $0x58] sm:$0xff]  ;;  %v854_v46 = vld [vmem:[%s1786_s16 + $0x50] sm:$0xff] }
  0xa0   : > { %v857_v56 = vld [vmem:[%s1786_s16 + $0x68] sm:$0xff]  ;;  %v856_v58 = vld [vmem:[%s1786_s16 + $0x60] sm:$0xff] }
  0xce   : > { %v890_v3 = vpop.xlane.xlu1 %889 }
  0xcf   : > { %v1038_v4 = vadd.f32 %v890_v3, %v846_v1 }
  0xd0   : > { %v880_v5 = vpop.xlane.xlu0 %879 }
  0xd1   : > { %v1036_v6 = vadd.f32 %v880_v5, %v844_v2  ;;  %1071 = vst.msk [vmem:[%s1786_s16 + $0x10] sm:$0xff] %vm811_vm0, %v1038_v4  ;;  %v859_v4 = vld [vmem:[%s1786_s16 + $0x78] sm:$0xff]  ;;  %v858_v5 = vld [vmem:[%s1786_s16 + $0x70] sm:$0xff] }
  0xd3   : > { %1069 = vst.msk [vmem:[%s1786_s16] sm:$0xff] %vm811_vm0, %v1036_v6  ;;  %v895_v8 = vpop.xlane.xlu1 %894 }
  0xd4   : > { %v1039_v9 = vadd.f32 %v895_v8, %v847_v7 }
  0xd6   : > { %1072 = vst.msk [vmem:[%s1786_s16 + $0x18] sm:$0xff] %vm811_vm0, %v1039_v9  ;;  %v885_v11 = vpop.xlane.xlu0 %884 }
  0xd7   : > { %v1037_v12 = vadd.f32 %v885_v11, %v845_v10 }
  0xd8   : > { %v1106_v14 = vld [vmem:[%s1786_s16 + $0x10] sm:$0xff] }
  0xd9   : > { %1070 = vst.msk [vmem:[%s1786_s16 + $0x8] sm:$0xff] %vm811_vm0, %v1037_v12  ;;  %v905_v15 = vpop.xlane.xlu1 %904  ;;  %v1138_v17 = vmax.f32 %v1106_v14, 1.0 }
  0xda   : > { %v1104_v18 = vld [vmem:[%s1786_s16] sm:$0xff]  ;;  %v1041_v19 = vadd.f32 %v905_v15, %v849_v13 }
  0xdb   : > { %v1136_v20 = vmax.f32 %v1104_v18, 1.0  ;;  %1460 = vrsqrt.f32 %v1138_v17  ;;  %v861_v17 = vld [vmem:[%s1786_s16 + $0x88] sm:$0xff]  ;;  %v860_v18 = vld [vmem:[%s1786_s16 + $0x80] sm:$0xff] }
  0xdc   : > { %1074 = vst.msk [vmem:[%s1786_s16 + $0x28] sm:$0xff] %vm811_vm0, %v1041_v19 }
  0xdd   : > { %1462 = vrsqrt.f32 %v1136_v20  ;;  %v1107_v24 = vld [vmem:[%s1786_s16 + $0x18] sm:$0xff]  ;;  %v915_v27 = vpop.xlane.xlu1 %914 }
  0xde   : > { %v1139_v26 = vmax.f32 %v1107_v24, 1.0  ;;  %v1043_v28 = vadd.f32 %v915_v27, %v851_v23  ;;  %v863_v27 = vld [vmem:[%s1786_s16 + $0x98] sm:$0xff] }
  0xe0   : > { %1464 = vrsqrt.f32 %v1139_v26  ;;  %v1105_v30 = vld [vmem:[%s1786_s16 + $0x8] sm:$0xff]  ;;  %1076 = vst.msk [vmem:[%s1786_s16 + $0x38] sm:$0xff] %vm811_vm0, %v1043_v28 }
  0xe1   : > { %v900_v21 = vpop.xlane.xlu0 %899  ;;  %v1137_v32 = vmax.f32 %v1105_v30, 1.0 }
  0xe2   : > { %v1040_v22 = vadd.f32 %v900_v21, %v848_v16 }
  0xe3   : > { %1466 = vrsqrt.f32 %v1137_v32  ;;  %v1109_v34 = vld [vmem:[%s1786_s16 + $0x28] sm:$0xff] }
  0xe4   : > { %1073 = vst.msk [vmem:[%s1786_s16 + $0x20] sm:$0xff] %vm811_vm0, %v1040_v22  ;;  %v1141_v36 = vmax.f32 %v1109_v34, 1.0 }
  0xe5   : > { %v910_v29 = vpop.xlane.xlu0 %909  ;;  %v925_v37 = vpop.xlane.xlu1 %924 }
  0xe6   : > { %v1042_v31 = vadd.f32 %v910_v29, %v850_v25  ;;  %v1045_v39 = vadd.f32 %v925_v37, %v853_v33  ;;  %v1461_v41 = vpop.eup %1460  ;;  %1468 = vrsqrt.f32 %v1141_v36  ;;  %v862_v29 = vld [vmem:[%s1786_s16 + $0x90] sm:$0xff] }
  0xe7   : > { %v1463_v45 = vpop.eup %1462  ;;  %1202 = vst.msk [vmem:[%s1786_s16 + $0x10] sm:$0xff] %vm811_vm0, %v1461_v41  ;;  %v1111_v47 = vld [vmem:[%s1786_s16 + $0x38] sm:$0xff]  ;;  %v865_v41 = vld [vmem:[%s1786_s16 + $0xa8] sm:$0xff] }
  0xe8   : > { %1075 = vst.msk [vmem:[%s1786_s16 + $0x30] sm:$0xff] %vm811_vm0, %v1042_v31  ;;  %1078 = vst.msk [vmem:[%s1786_s16 + $0x48] sm:$0xff] %vm811_vm0, %v1045_v39  ;;  %v1143_v49 = vmax.f32 %v1111_v47, 1.0 }
  0xe9   : > { %v920_v40 = vpop.xlane.xlu0 %919  ;;  %1200 = vst.msk [vmem:[%s1786_s16] sm:$0xff] %vm811_vm0, %v1463_v45  ;;  %v935_v48 = vpop.xlane.xlu1 %934 }
  0xea   : > { %v1044_v43 = vadd.f32 %v920_v40, %v852_v35  ;;  %v1047_v51 = vadd.f32 %v935_v48, %v855_v44  ;;  %v1465_v53 = vpop.eup %1464 }
  0xeb   : > { %v1108_v38 = vld [vmem:[%s1786_s16 + $0x20] sm:$0xff]  ;;  %1203 = vst.msk [vmem:[%s1786_s16 + $0x18] sm:$0xff] %vm811_vm0, %v1465_v53  ;;  %v866_v53 = vld [vmem:[%s1786_s16 + $0xb0] sm:$0xff] }
  0xec   : > { %v1140_v42 = vmax.f32 %v1108_v38, 1.0  ;;  %1077 = vst.msk [vmem:[%s1786_s16 + $0x40] sm:$0xff] %vm811_vm0, %v1044_v43  ;;  %1080 = vst.msk [vmem:[%s1786_s16 + $0x58] sm:$0xff] %vm811_vm0, %v1047_v51  ;;  %v867_v51 = vld [vmem:[%s1786_s16 + $0xb8] sm:$0xff] }
  0xed   : > { %v930_v52 = vpop.xlane.xlu0 %929  ;;  %v1467_v57 = vpop.eup %1466 }
  0xee   : > { %1470 = vrsqrt.f32 %v1140_v42  ;;  %v1046_v55 = vadd.f32 %v930_v52, %v854_v46  ;;  %1201 = vst.msk [vmem:[%s1786_s16 + $0x8] sm:$0xff] %vm811_vm0, %v1467_v57  ;;  %v945_v60 = vpop.xlane.xlu1 %944  ;;  %v864_v42 = vld [vmem:[%s1786_s16 + $0xa0] sm:$0xff] }
  0xef   : > { %v1110_v50 = vld [vmem:[%s1786_s16 + $0x30] sm:$0xff]  ;;  %1472 = vrsqrt.f32 %v1143_v49  ;;  %v1113_v59 = vld [vmem:[%s1786_s16 + $0x48] sm:$0xff]  ;;  %v1049_v63 = vadd.f32 %v945_v60, %v857_v56 }
  0xf0   : > { %v1142_v54 = vmax.f32 %v1110_v50, 1.0  ;;  %1079 = vst.msk [vmem:[%s1786_s16 + $0x50] sm:$0xff] %vm811_vm0, %v1046_v55  ;;  %v1145_v61 = vmax.f32 %v1113_v59, 1.0  ;;  %v1469_v1 = vpop.eup %1468 }
  0xf1   : > { %v940_v0 = vpop.xlane.xlu0 %939  ;;  %1205 = vst.msk [vmem:[%s1786_s16 + $0x28] sm:$0xff] %vm811_vm0, %v1469_v1  ;;  %1082 = vst.msk [vmem:[%s1786_s16 + $0x68] sm:$0xff] %vm811_vm0, %v1049_v63  ;;  %v869_v1 = vld [vmem:[%s1786_s16 + $0xc8] sm:$0xff] }
  0xf2   : > { %1474 = vrsqrt.f32 %v1142_v54  ;;  %v1048_v3 = vadd.f32 %v940_v0, %v856_v58  ;;  %v955_v8 = vpop.xlane.xlu1 %954 }
  0xf3   : > { %v1112_v62 = vld [vmem:[%s1786_s16 + $0x40] sm:$0xff]  ;;  %1476 = vrsqrt.f32 %v1145_v61  ;;  %v1115_v7 = vld [vmem:[%s1786_s16 + $0x58] sm:$0xff]  ;;  %v1051_v11 = vadd.f32 %v955_v8, %v859_v4 }
  0xf4   : > { %v1144_v2 = vmax.f32 %v1112_v62, 1.0  ;;  %1081 = vst.msk [vmem:[%s1786_s16 + $0x60] sm:$0xff] %vm811_vm0, %v1048_v3  ;;  %v1147_v9 = vmax.f32 %v1115_v7, 1.0 }
  0xf5   : > { %v950_v12 = vpop.xlane.xlu0 %949  ;;  %1084 = vst.msk [vmem:[%s1786_s16 + $0x78] sm:$0xff] %vm811_vm0, %v1051_v11  ;;  %v871_v11 = vld [vmem:[%s1786_s16 + $0xd8] sm:$0xff] }
  0xf6   : > { %1478 = vrsqrt.f32 %v1144_v2  ;;  %v1050_v14 = vadd.f32 %v950_v12, %v858_v5  ;;  %v868_v2 = vld [vmem:[%s1786_s16 + $0xc0] sm:$0xff] }
  0xf7   : > { %v1114_v10 = vld [vmem:[%s1786_s16 + $0x50] sm:$0xff]  ;;  %1480 = vrsqrt.f32 %v1147_v9 }
  0xf8   : > { %v1471_v6 = vpop.eup %1470  ;;  %v1146_v13 = vmax.f32 %v1114_v10, 1.0  ;;  %1083 = vst.msk [vmem:[%s1786_s16 + $0x70] sm:$0xff] %vm811_vm0, %v1050_v14  ;;  %v1117_v19 = vld [vmem:[%s1786_s16 + $0x68] sm:$0xff]  ;;  %v965_v20 = vpop.xlane.xlu1 %964 }
  0xf9   : > { %1204 = vst.msk [vmem:[%s1786_s16 + $0x20] sm:$0xff] %vm811_vm0, %v1471_v6  ;;  %v1473_v15 = vpop.eup %1472  ;;  %v1149_v21 = vmax.f32 %v1117_v19, 1.0  ;;  %v1053_v23 = vadd.f32 %v965_v20, %v861_v17  ;;  %v960_v24 = vpop.xlane.xlu0 %959 }
  0xfa   : > { %1207 = vst.msk [vmem:[%s1786_s16 + $0x38] sm:$0xff] %vm811_vm0, %v1473_v15  ;;  %1482 = vrsqrt.f32 %v1146_v13  ;;  %v1052_v26 = vadd.f32 %v960_v24, %v860_v18  ;;  %v870_v13 = vld [vmem:[%s1786_s16 + $0xd0] sm:$0xff] }
  0xfb   : > { %v1116_v22 = vld [vmem:[%s1786_s16 + $0x60] sm:$0xff]  ;;  %1484 = vrsqrt.f32 %v1149_v21  ;;  %1086 = vst.msk [vmem:[%s1786_s16 + $0x88] sm:$0xff] %vm811_vm0, %v1053_v23 }
  0xfc   : > { %v1475_v16 = vpop.eup %1474  ;;  %v1148_v25 = vmax.f32 %v1116_v22, 1.0  ;;  %v1119_v31 = vld [vmem:[%s1786_s16 + $0x78] sm:$0xff]  ;;  %1085 = vst.msk [vmem:[%s1786_s16 + $0x80] sm:$0xff] %vm811_vm0, %v1052_v26  ;;  %v975_v32 = vpop.xlane.xlu1 %974  ;;  %v872_v26 = vld [vmem:[%s1786_s16 + $0xe0] sm:$0xff] }
  0xfd   : > { %1206 = vst.msk [vmem:[%s1786_s16 + $0x30] sm:$0xff] %vm811_vm0, %v1475_v16  ;;  %v1477_v28 = vpop.eup %1476  ;;  %v1151_v33 = vmax.f32 %v1119_v31, 1.0  ;;  %v1055_v35 = vadd.f32 %v975_v32, %v863_v27  ;;  %v970_v36 = vpop.xlane.xlu0 %969 }
  0xfe   : > { %1209 = vst.msk [vmem:[%s1786_s16 + $0x48] sm:$0xff] %vm811_vm0, %v1477_v28  ;;  %1486 = vrsqrt.f32 %v1148_v25  ;;  %v1054_v38 = vadd.f32 %v970_v36, %v862_v29  ;;  %v873_v25 = vld [vmem:[%s1786_s16 + $0xe8] sm:$0xff] }
  0xff   : > { %v1118_v34 = vld [vmem:[%s1786_s16 + $0x70] sm:$0xff]  ;;  %1488 = vrsqrt.f32 %v1151_v33  ;;  %1088 = vst.msk [vmem:[%s1786_s16 + $0x98] sm:$0xff] %vm811_vm0, %v1055_v35  ;;  %v875_v35 = vld [vmem:[%s1786_s16 + $0xf8] sm:$0xff] }
 0x100   : > { %v1479_v30 = vpop.eup %1478  ;;  %v1150_v37 = vmax.f32 %v1118_v34, 1.0  ;;  %1087 = vst.msk [vmem:[%s1786_s16 + $0x90] sm:$0xff] %vm811_vm0, %v1054_v38 }
 0x101   : > { %1208 = vst.msk [vmem:[%s1786_s16 + $0x40] sm:$0xff] %vm811_vm0, %v1479_v30  ;;  %v1481_v39 = vpop.eup %1480 }
 0x102   : > { %1211 = vst.msk [vmem:[%s1786_s16 + $0x58] sm:$0xff] %vm811_vm0, %v1481_v39  ;;  %1490 = vrsqrt.f32 %v1150_v37  ;;  %v1121_v43 = vld [vmem:[%s1786_s16 + $0x88] sm:$0xff]  ;;  %v985_v44 = vpop.xlane.xlu1 %984  ;;  %v874_v37 = vld [vmem:[%s1786_s16 + $0xf0] sm:$0xff] }
 0x103   : > { %v1153_v45 = vmax.f32 %v1121_v43, 1.0  ;;  %v1120_v46 = vld [vmem:[%s1786_s16 + $0x80] sm:$0xff]  ;;  %v1057_v47 = vadd.f32 %v985_v44, %v865_v41  ;;  %v980_v48 = vpop.xlane.xlu0 %979 }
 0x104   : > { %v1483_v40 = vpop.eup %1482  ;;  %v1152_v49 = vmax.f32 %v1120_v46, 1.0  ;;  %v1056_v50 = vadd.f32 %v980_v48, %v864_v42 }
 0x105   : > { %1210 = vst.msk [vmem:[%s1786_s16 + $0x50] sm:$0xff] %vm811_vm0, %v1483_v40  ;;  %v1485_v52 = vpop.eup %1484  ;;  %1492 = vrsqrt.f32 %v1153_v45  ;;  %1090 = vst.msk [vmem:[%s1786_s16 + $0xa8] sm:$0xff] %vm811_vm0, %v1057_v47 }
 0x106   : > { %1213 = vst.msk [vmem:[%s1786_s16 + $0x68] sm:$0xff] %vm811_vm0, %v1485_v52  ;;  %1494 = vrsqrt.f32 %v1152_v49  ;;  %v1123_v55 = vld [vmem:[%s1786_s16 + $0x98] sm:$0xff]  ;;  %1089 = vst.msk [vmem:[%s1786_s16 + $0xa0] sm:$0xff] %vm811_vm0, %v1056_v50  ;;  %v995_v56 = vpop.xlane.xlu1 %994 }
 0x107   : > { %v1155_v57 = vmax.f32 %v1123_v55, 1.0  ;;  %v1122_v58 = vld [vmem:[%s1786_s16 + $0x90] sm:$0xff]  ;;  %v1059_v59 = vadd.f32 %v995_v56, %v867_v51  ;;  %v990_v60 = vpop.xlane.xlu0 %989 }
 0x108   : > { %v1487_v54 = vpop.eup %1486  ;;  %v1154_v61 = vmax.f32 %v1122_v58, 1.0  ;;  %v1058_v62 = vadd.f32 %v990_v60, %v866_v53 }
 0x109   : > { %1212 = vst.msk [vmem:[%s1786_s16 + $0x60] sm:$0xff] %vm811_vm0, %v1487_v54  ;;  %v1489_v63 = vpop.eup %1488  ;;  %1496 = vrsqrt.f32 %v1155_v57  ;;  %1092 = vst.msk [vmem:[%s1786_s16 + $0xb8] sm:$0xff] %vm811_vm0, %v1059_v59 }
 0x10a   : > { %1215 = vst.msk [vmem:[%s1786_s16 + $0x78] sm:$0xff] %vm811_vm0, %v1489_v63  ;;  %1498 = vrsqrt.f32 %v1154_v61  ;;  %1091 = vst.msk [vmem:[%s1786_s16 + $0xb0] sm:$0xff] %vm811_vm0, %v1058_v62 }
 0x10c   : > { %v1491_v0 = vpop.eup %1490  ;;  %v1125_v3 = vld [vmem:[%s1786_s16 + $0xa8] sm:$0xff]  ;;  %v1005_v4 = vpop.xlane.xlu1 %1004 }
 0x10d   : > { %1214 = vst.msk [vmem:[%s1786_s16 + $0x70] sm:$0xff] %vm811_vm0, %v1491_v0  ;;  %v1157_v5 = vmax.f32 %v1125_v3, 1.0  ;;  %v1124_v6 = vld [vmem:[%s1786_s16 + $0xa0] sm:$0xff]  ;;  %v1061_v7 = vadd.f32 %v1005_v4, %v869_v1  ;;  %v1000_v8 = vpop.xlane.xlu0 %999 }
 0x10e   : > { %v1156_v9 = vmax.f32 %v1124_v6, 1.0  ;;  %v1060_v10 = vadd.f32 %v1000_v8, %v868_v2 }
 0x10f   : > { %v1493_v12 = vpop.eup %1492  ;;  %1500 = vrsqrt.f32 %v1157_v5  ;;  %1094 = vst.msk [vmem:[%s1786_s16 + $0xc8] sm:$0xff] %vm811_vm0, %v1061_v7 }
 0x110   : > { %v1495_v14 = vpop.eup %1494  ;;  %1217 = vst.msk [vmem:[%s1786_s16 + $0x88] sm:$0xff] %vm811_vm0, %v1493_v12  ;;  %1502 = vrsqrt.f32 %v1156_v9  ;;  %v1127_v15 = vld [vmem:[%s1786_s16 + $0xb8] sm:$0xff]  ;;  %1093 = vst.msk [vmem:[%s1786_s16 + $0xc0] sm:$0xff] %vm811_vm0, %v1060_v10  ;;  %v1015_v16 = vpop.xlane.xlu1 %1014 }
 0x111   : > { %1216 = vst.msk [vmem:[%s1786_s16 + $0x80] sm:$0xff] %vm811_vm0, %v1495_v14  ;;  %v1159_v17 = vmax.f32 %v1127_v15, 1.0  ;;  %v1126_v18 = vld [vmem:[%s1786_s16 + $0xb0] sm:$0xff]  ;;  %v1063_v19 = vadd.f32 %v1015_v16, %v871_v11  ;;  %v1010_v20 = vpop.xlane.xlu0 %1009 }
 0x112   : > { %v1158_v21 = vmax.f32 %v1126_v18, 1.0  ;;  %v1062_v22 = vadd.f32 %v1010_v20, %v870_v13 }
 0x113   : > { %v1497_v23 = vpop.eup %1496  ;;  %1504 = vrsqrt.f32 %v1159_v17  ;;  %1096 = vst.msk [vmem:[%s1786_s16 + $0xd8] sm:$0xff] %vm811_vm0, %v1063_v19 }
 0x114   : > { %v1499_v24 = vpop.eup %1498  ;;  %1219 = vst.msk [vmem:[%s1786_s16 + $0x98] sm:$0xff] %vm811_vm0, %v1497_v23  ;;  %1506 = vrsqrt.f32 %v1158_v21  ;;  %1095 = vst.msk [vmem:[%s1786_s16 + $0xd0] sm:$0xff] %vm811_vm0, %v1062_v22 }
 0x115   : > { %1218 = vst.msk [vmem:[%s1786_s16 + $0x90] sm:$0xff] %vm811_vm0, %v1499_v24 }
 0x116   : > { %v1129_v27 = vld [vmem:[%s1786_s16 + $0xc8] sm:$0xff]  ;;  %v1025_v28 = vpop.xlane.xlu1 %1024 }
 0x117   : > { %v1161_v29 = vmax.f32 %v1129_v27, 1.0  ;;  %v1128_v30 = vld [vmem:[%s1786_s16 + $0xc0] sm:$0xff]  ;;  %v1065_v31 = vadd.f32 %v1025_v28, %v873_v25  ;;  %v1020_v32 = vpop.xlane.xlu0 %1019 }
 0x118   : > { %v1160_v33 = vmax.f32 %v1128_v30, 1.0  ;;  %v1064_v34 = vadd.f32 %v1020_v32, %v872_v26 }
 0x119   : > { %v1501_v36 = vpop.eup %1500  ;;  %1508 = vrsqrt.f32 %v1161_v29  ;;  %1098 = vst.msk [vmem:[%s1786_s16 + $0xe8] sm:$0xff] %vm811_vm0, %v1065_v31 }
 0x11a   : > { %v1503_v38 = vpop.eup %1502  ;;  %1221 = vst.msk [vmem:[%s1786_s16 + $0xa8] sm:$0xff] %vm811_vm0, %v1501_v36  ;;  %1510 = vrsqrt.f32 %v1160_v33  ;;  %v1131_v39 = vld [vmem:[%s1786_s16 + $0xd8] sm:$0xff]  ;;  %1097 = vst.msk [vmem:[%s1786_s16 + $0xe0] sm:$0xff] %vm811_vm0, %v1064_v34  ;;  %v1035_v40 = vpop.xlane.xlu1 %1034 }
 0x11b   : > { %1220 = vst.msk [vmem:[%s1786_s16 + $0xa0] sm:$0xff] %vm811_vm0, %v1503_v38  ;;  %v1163_v41 = vmax.f32 %v1131_v39, 1.0  ;;  %v1130_v42 = vld [vmem:[%s1786_s16 + $0xd0] sm:$0xff]  ;;  %v1067_v43 = vadd.f32 %v1035_v40, %v875_v35  ;;  %v1030_v44 = vpop.xlane.xlu0 %1029 }
 0x11c   : > { %v1162_v45 = vmax.f32 %v1130_v42, 1.0  ;;  %v1066_v46 = vadd.f32 %v1030_v44, %v874_v37 }
 0x11d   : > { %v1505_v47 = vpop.eup %1504  ;;  %1512 = vrsqrt.f32 %v1163_v41  ;;  %1100 = vst.msk [vmem:[%s1786_s16 + $0xf8] sm:$0xff] %vm811_vm0, %v1067_v43 }
 0x11e   : > { %v1507_v48 = vpop.eup %1506  ;;  %1223 = vst.msk [vmem:[%s1786_s16 + $0xb8] sm:$0xff] %vm811_vm0, %v1505_v47  ;;  %1514 = vrsqrt.f32 %v1162_v45  ;;  %1099 = vst.msk [vmem:[%s1786_s16 + $0xf0] sm:$0xff] %vm811_vm0, %v1066_v46 }
 0x11f   : > { %1222 = vst.msk [vmem:[%s1786_s16 + $0xb0] sm:$0xff] %vm811_vm0, %v1507_v48 }
 0x120   : > { %v1133_v49 = vld [vmem:[%s1786_s16 + $0xe8] sm:$0xff] }
 0x121   : > { %v1165_v50 = vmax.f32 %v1133_v49, 1.0  ;;  %v1132_v51 = vld [vmem:[%s1786_s16 + $0xe0] sm:$0xff] }
 0x122   : > { %v1164_v52 = vmax.f32 %v1132_v51, 1.0 }
 0x123   : > { %v1509_v53 = vpop.eup %1508  ;;  %1516 = vrsqrt.f32 %v1165_v50 }
 0x124   : > { %v1511_v54 = vpop.eup %1510  ;;  %1225 = vst.msk [vmem:[%s1786_s16 + $0xc8] sm:$0xff] %vm811_vm0, %v1509_v53  ;;  %1518 = vrsqrt.f32 %v1164_v52  ;;  %v1135_v55 = vld [vmem:[%s1786_s16 + $0xf8] sm:$0xff] }
 0x125   : > { %1224 = vst.msk [vmem:[%s1786_s16 + $0xc0] sm:$0xff] %vm811_vm0, %v1511_v54  ;;  %v1167_v56 = vmax.f32 %v1135_v55, 1.0  ;;  %v1134_v57 = vld [vmem:[%s1786_s16 + $0xf0] sm:$0xff] }
 0x126   : > { %v1166_v58 = vmax.f32 %v1134_v57, 1.0 }
 0x127   : > { %v1513_v59 = vpop.eup %1512  ;;  %1520 = vrsqrt.f32 %v1167_v56 }
 0x128   : > { %v1515_v60 = vpop.eup %1514  ;;  %1227 = vst.msk [vmem:[%s1786_s16 + $0xd8] sm:$0xff] %vm811_vm0, %v1513_v59  ;;  %1522 = vrsqrt.f32 %v1166_v58 }
 0x129   : > { %1226 = vst.msk [vmem:[%s1786_s16 + $0xd0] sm:$0xff] %vm811_vm0, %v1515_v60 }
 0x12d   : > { %v1517_v61 = vpop.eup %1516 }
 0x12e   : > { %v1519_v62 = vpop.eup %1518  ;;  %1229 = vst.msk [vmem:[%s1786_s16 + $0xe8] sm:$0xff] %vm811_vm0, %v1517_v61 }
 0x12f   : > { %1228 = vst.msk [vmem:[%s1786_s16 + $0xe0] sm:$0xff] %vm811_vm0, %v1519_v62 }
 0x131   : > { %v1521_v63 = vpop.eup %1520 }
 0x132   : > { %v1523_v0 = vpop.eup %1522  ;;  %1231 = vst.msk [vmem:[%s1786_s16 + $0xf8] sm:$0xff] %vm811_vm0, %v1521_v63 }
 0x133   : > { %1230 = vst.msk [vmem:[%s1786_s16 + $0xf0] sm:$0xff] %vm811_vm0, %v1523_v0 }
 0x134 PF: > { %s1273_s22 = sand.u32 1, %s1616_s9   ;;  %p2288_p11 = scmp.ne.s32.totalorder %s2284_s24, 0 }
 0x135   : > { %p2289_p13 = scmp.ge.s32.totalorder %s1636_s14, 2  ;;  %s1274_s3 = scalar_lea.sflag [#allocation4], %s1273_s22 }
 0x137   : > { %p1402_p2 = pnand %p2289_p13, %p2288_p11 }
 0x139   : > { %1611 = dma.done.wait (!%p1402_p2), %s1274_s3, 4096  }
 0x13a   : > { %1613 = vsyncadd (!%p1402_p2), %s1274_s3, 4294963200  ;;  %s19_s14 = sadd.s32 1, %s1636_s14   ;;  %s2290_s9 = smov %s1620_s10 }
 0x13b   : > { %p16_p5 = scmp.ge.s32.totalorder %s19_s14, 4   ;;  %s2291_s10 = smov %s1624_s11 }
 0x13c   : > { %s2292_s11 = smov %s1716_s23  ;;  %s2293_s12 = smov %s1632_s13 }
 0x13d   : > { %s2294_s13 = smov %s2296_s17  ;;  %18 = sbr.rel (!%p16_p5) target bundleno = 6 (0x6), region = 89 }
 0x144   :  { %1287 = vsyncpa [#allocation3], 1 }
 0x145   :  { %1289 = vsyncpa [#allocation3 + $0x1], 1 }
 0x146   :  { %1290 = vsyncpa [#allocation4], 1 }
 0x147   :  { %1292 = vsyncpa [#allocation4 + $0x1], 1 }

</bundles_post_ra>
